<compile_context>
chip_gen: v7x
topology: tpu7x:2x2x1
jax: 0.10.0
libtpu: 0.0.40
codegen_flags: <defaults>
</compile_context>

<pallas_src>
import functools
from typing import NamedTuple

import jax
import jax.numpy as jnp
from jax.experimental import pallas as pl
from jax.experimental.pallas import tpu as pltpu


_LANE = 128
_SUBLANE = 8


def _round_up(x, m):
    return ((x + m - 1) // m) * m


def _sigmoid(y):
    # exp + approximate reciprocal both map to the EUP slot (otherwise idle),
    # keeping the VPU free on the two head layers.
    return pl.reciprocal(1.0 + jnp.exp(-y), approx=True)


class Meta(NamedTuple):
    in_dim: int
    n_coarse: int
    n_fine: int
    coarse_bits: int
    fine_bits: int
    ip: int          # lane-padded input width
    pw: int          # lane-padded layer width
    pack_heads: bool  # both heads fit in a single pw-wide output slab


def _mlp_kernel(n_coarse, n_fine, coarse_bits, pw, pack_heads,
                x_ref, w0_ref, ws_ref, bs_ref, out_ref):
    """Runs the full coarse->fine MLP on one (batch_tile, ip) block.

    x_ref  : (bt, ip)            f32/bf16
    w0_ref : (ip, pw)            bf16   first coarse Linear (single-buffered)
    ws_ref : (n_total-1, pw, pw) bf16   remaining Linears, stacked (single-buffered)
    bs_ref : (n_total, pw)       f32    biases, stacked (single-buffered)
    out_ref: (bt, pw) packed  or (bt, 2*pw) unpacked   bf16
    """
    n_total = n_coarse + n_fine
    h = x_ref[...].astype(jnp.bfloat16)            # MXU operands in bf16
    coarse_bf = None
    for li in range(n_total):                      # statically unrolled layer loop
        w = w0_ref[...] if li == 0 else ws_ref[li - 1]
        b = bs_ref[pl.ds(li, 1), :]                # (1, pw) f32
        y = jnp.dot(h, w, preferred_element_type=jnp.float32) + b
        if li == n_coarse - 1:
            # Coarse head (Sigmoid).  Only the bf16 copy stays live (it feeds
            # the fine stack anyway); in the unpacked layout store it right
            # away so the write retires early and its vregs are freed.
            coarse_bf = _sigmoid(y).astype(jnp.bfloat16)
            if not pack_heads:
                out_ref[:, 0:pw] = coarse_bf.astype(out_ref.dtype)
            h = coarse_bf
        elif li == n_total - 1:
            fine = _sigmoid(y)                     # (bt, pw) f32
            if pack_heads:
                # Pack both heads into ONE pw-wide lane-dense slab:
                #   lanes [0 : coarse_bits]                      -> coarse head
                #   lanes [coarse_bits : coarse_bits+fine_bits]  -> fine head
                # roll is an XLU op (separate VLIW slot), essentially free.
                fine_rolled = pltpu.roll(fine, shift=coarse_bits, axis=1)
                lane = jax.lax.broadcasted_iota(jnp.int32, fine.shape, 1)
                packed = jnp.where(lane < coarse_bits,
                                   coarse_bf.astype(jnp.float32), fine_rolled)
                out_ref[...] = packed.astype(out_ref.dtype)
            else:
                out_ref[:, pw:2 * pw] = fine.astype(out_ref.dtype)
        else:
            h = jnp.maximum(y, 0.0).astype(jnp.bfloat16)   # ReLU


def pack_params(coarse_params, fine_params):
    """Pad / stack / bf16-cast all Linear parameters ONCE (do this at init,
    not per forward call).  Each params list holds (W[in,out], b[1,out])."""
    n_coarse, n_fine = len(coarse_params), len(fine_params)
    n_total = n_coarse + n_fine
    assert n_total >= 2, "need at least two Linear layers"

    in_dim = coarse_params[0][0].shape[0]
    coarse_bits = coarse_params[-1][0].shape[1]
    fine_bits = fine_params[-1][0].shape[1]
    fine_in = fine_params[0][0].shape[0]
    # The PyTorch module feeds coarse_output straight into fine_layer whose
    # first Linear expects hidden_dim inputs -> requires coarse_bits == hidden_dim.
    assert coarse_bits == fine_in, (
        "fine_layer input width must equal coarse_bits "
        "(the module requires coarse_bits == hidden_dim)")

    all_params = list(coarse_params) + list(fine_params)
    max_w = max(w.shape[1] for (w, _b) in all_params)
    # Lane padding: 128 for small widths; 256-aligned once real widths exceed
    # 128 (full-width pushes on v6e/v7x's 2x256^2 MXU).  The streamed x
    # operand keeps 128-alignment to avoid inflating the dominant HBM read.
    pw = _LANE if max_w <= _LANE else _round_up(max_w, 2 * _LANE)
    ip = _round_up(in_dim, _LANE)

    def pad_w(w, rows, cols):
        return jnp.pad(w, ((0, rows - w.shape[0]), (0, cols - w.shape[1])))

    w0 = pad_w(all_params[0][0], ip, pw).astype(jnp.bfloat16)
    ws = jnp.stack([pad_w(w, pw, pw) for (w, _b) in all_params[1:]]
                   ).astype(jnp.bfloat16)
    bs = jnp.stack([jnp.pad(b.reshape(-1), (0, pw - b.shape[-1]))
                    for (_w, b) in all_params]).astype(jnp.float32)   # (n_total, pw)

    meta = Meta(in_dim=in_dim, n_coarse=n_coarse, n_fine=n_fine,
                coarse_bits=coarse_bits, fine_bits=fine_bits,
                ip=ip, pw=pw,
                pack_heads=(coarse_bits + fine_bits) <= pw)
    return w0, ws, bs, meta


def hierarchical_forward(x, w0, ws, bs, meta, *, batch_tile=None):
    batch, in_dim = x.shape
    assert in_dim == meta.in_dim
    n_total = meta.n_coarse + meta.n_fine
    ip, pw = meta.ip, meta.pw
    out_w = pw if meta.pack_heads else 2 * pw

    # --- batch tiling: target >=4 grid steps (>=2 per TensorCore on v7x
    #     megacore) so load/store DMAs pipeline against compute; tile capped
    #     at 512 rows so large batches still amortize per-step overhead.
    if batch_tile is None:
        bt = -(-batch // 4)
        bt = max(_SUBLANE, _round_up(bt, _SUBLANE))
        if bt > _LANE:
            bt = _round_up(bt, _LANE)   # keep the MXU M-dim deep & aligned
        batch_tile = min(bt, 512)
    batch_tile = max(_SUBLANE, _round_up(int(batch_tile), _SUBLANE))
    grid = -(-batch // batch_tile)
    padded_batch = grid * batch_tile

    xp = x
    if padded_batch != batch or ip != in_dim:
        xp = jnp.pad(x, ((0, padded_batch - batch), (0, ip - in_dim)))

    # --- explicit VMEM budget: streamed blocks x2 (double-buffered),
    #     weights/biases x1 (single-buffered, constant index_map).
    d_in = jnp.dtype(xp.dtype).itemsize
    est = (2 * batch_tile * ip * d_in                    # x block
           + 2 * batch_tile * out_w * 2                  # bf16 output block
           + ip * pw * 2                                 # w0 (bf16)
           + (n_total - 1) * pw * pw * 2                 # stacked weights (bf16)
           + _round_up(n_total, _SUBLANE) * pw * 4)      # biases (f32)
    try:
        vmem_cap = int(pltpu.get_tpu_info().vmem_capacity_bytes)
    except Exception:
        vmem_cap = 64 << 20                              # conservative: v7x per-TC
    frac = 0.75 if vmem_cap > (96 << 20) else 0.55       # leave compiler headroom
    vmem_limit = int(min(max(est + (4 << 20), 16 << 20), frac * vmem_cap))

    kernel = functools.partial(_mlp_kernel, meta.n_coarse, meta.n_fine,
                               meta.coarse_bits, pw, meta.pack_heads)
    const = pl.Buffered(1)   # weights/biases never change across grid steps
    out = pl.pallas_call(
        kernel,
        out_shape=jax.ShapeDtypeStruct((padded_batch, out_w), jnp.bfloat16),
        grid_spec=pltpu.PrefetchScalarGridSpec(
            num_scalar_prefetch=0,
            grid=(grid,),
            in_specs=[
                pl.BlockSpec((batch_tile, ip), lambda i: (i, 0)),
                pl.BlockSpec((ip, pw), lambda i: (0, 0), pipeline_mode=const),
                pl.BlockSpec((n_total - 1, pw, pw), lambda i: (0, 0, 0),
                             pipeline_mode=const),
                pl.BlockSpec((n_total, pw), lambda i: (0, 0), pipeline_mode=const),
            ],
            out_specs=pl.BlockSpec((batch_tile, out_w), lambda i: (i, 0)),
        ),
        compiler_params=pltpu.CompilerParams(
            dimension_semantics=("parallel",),
            vmem_limit_bytes=vmem_limit,
        ),
    )(xp, w0, ws, bs)

    if meta.pack_heads:
        coarse = out[:batch, :meta.coarse_bits]
        fine = out[:batch, meta.coarse_bits:meta.coarse_bits + meta.fine_bits]
    else:
        coarse = out[:batch, :meta.coarse_bits]
        fine = out[:batch, pw:pw + meta.fine_bits]
    return coarse.astype(x.dtype), fine.astype(x.dtype)


# ----------------------------------------------------------------------------
# test harness
# ----------------------------------------------------------------------------

def _init_stack(key, dims):
    """dims = [d0, d1, ..., dk] -> list of (W[d_i, d_{i+1}], b[1, d_{i+1}])."""
    params = []
    for din, dout in zip(dims[:-1], dims[1:]):
        key, kw, kb = jax.random.split(key, 3)
        w = jax.random.normal(kw, (din, dout), jnp.float32) * (1.0 / jnp.sqrt(din))
        b = jax.random.normal(kb, (1, dout), jnp.float32) * 0.01
        params.append((w, b))
    return key, params


def _reference(x, coarse_params, fine_params):
    def run(h, params):
        for li, (w, b) in enumerate(params):
            h = h @ w + b
            h = jnp.maximum(h, 0.0) if li < len(params) - 1 else jax.nn.sigmoid(h)
        return h
    c = run(x, coarse_params)
    f = run(c, fine_params)
    return c, f


def _run_case(key, batch, input_size, hidden_dim, coarse_bits, fine_bits,
              layers_num):
    key, kx = jax.random.split(key)
    x = jax.random.normal(kx, (batch, input_size), jnp.float32)

    # coarse stack: Linear(in,h) + (layers_num-1) x Linear(h,h) + Linear(h,coarse)
    coarse_dims = [input_size] + [hidden_dim] * layers_num + [coarse_bits]
    # fine stack:   Linear(h,h) + (layers_num-1) x Linear(h,h) + Linear(h,fine)
    fine_dims = [hidden_dim] * (layers_num + 1) + [fine_bits]
    key, coarse_params = _init_stack(key, coarse_dims)
    key, fine_params = _init_stack(key, fine_dims)

    # pack once (hoisted out of the per-call path), run the jitted forward
    w0, ws, bs, meta = pack_params(coarse_params, fine_params)
    fwd = jax.jit(functools.partial(hierarchical_forward, meta=meta))
    coarse_out, fine_out = fwd(x, w0, ws, bs)
    jax.block_until_ready((coarse_out, fine_out))

    ref_c, ref_f = _reference(x, coarse_params, fine_params)
    assert coarse_out.shape == (batch, coarse_bits)
    assert fine_out.shape == (batch, fine_bits)
    # bf16 MXU operands / bf16 writeback with f32 accumulation -> loose tolerance.
    assert jnp.allclose(coarse_out, ref_c, atol=5e-2, rtol=5e-2), (
        "coarse max err %f" % float(jnp.max(jnp.abs(coarse_out - ref_c))))
    assert jnp.allclose(fine_out, ref_f, atol=5e-2, rtol=5e-2), (
        "fine max err %f" % float(jnp.max(jnp.abs(fine_out - ref_f))))
    return key


if __name__ == "__main__":
    key = jax.random.PRNGKey(0)
    # Case 1: packed single-slab output (coarse_bits + fine_bits <= 128),
    # batch_tile=128 -> grid=4 (>=2 steps per TensorCore on v7x).
    key = _run_case(key, batch=512, input_size=64, hidden_dim=32,
                    coarse_bits=32, fine_bits=16, layers_num=2)
    # Case 2: unpacked 2*pw slab (coarse_bits + fine_bits > 128), exercising
    # the "store coarse head immediately" path.
    key = _run_case(key, batch=64, input_size=48, hidden_dim=64,
                    coarse_bits=64, fine_bits=96, layers_num=1)
    print("KERNEL_OK")
</pallas_src>

<mosaic_0001>
module attributes {stable_mosaic.version = 11 : i64} {
  func.func @_mlp_kernel(%arg0: i32, %arg1: memref<128x128xf32, #tpu.memory_space<vmem>>, %arg2: memref<128x128xbf16, #tpu.memory_space<vmem>>, %arg3: memref<5x128x128xbf16, #tpu.memory_space<vmem>>, %arg4: memref<6x128xf32, #tpu.memory_space<vmem>>, %arg5: memref<128x128xbf16, #tpu.memory_space<vmem>>) attributes {dimension_semantics = [#tpu.dimension_semantics<parallel>], iteration_bounds = array<i64: 4>, scalar_prefetch = 0 : i64, scratch_operands = 0 : i64, tpu.core_type = #tpu.core_type<tc>, window_params = [{transform_indices = @transform_0, window_bounds = array<i64: 128, 128>}, {pipeline_mode = #tpu.pipeline_mode<synchronous>, transform_indices = @transform_1, window_bounds = array<i64: 128, 128>}, {pipeline_mode = #tpu.pipeline_mode<synchronous>, transform_indices = @transform_2, window_bounds = array<i64: 5, 128, 128>}, {pipeline_mode = #tpu.pipeline_mode<synchronous>, transform_indices = @transform_3, window_bounds = array<i64: 6, 128>}, {transform_indices = @transform_4, window_bounds = array<i64: 128, 128>}]} {
    %c0 = arith.constant 0 : index
    %c0_0 = arith.constant 0 : index
    %0 = vector.load %arg1[%c0, %c0_0] : memref<128x128xf32, #tpu.memory_space<vmem>>, vector<128x128xf32>
    %1 = arith.truncf %0 : vector<128x128xf32> to vector<128x128xbf16>
    %c0_1 = arith.constant 0 : index
    %c0_2 = arith.constant 0 : index
    %2 = vector.load %arg2[%c0_1, %c0_2] : memref<128x128xbf16, #tpu.memory_space<vmem>>, vector<128x128xbf16>
    %c0_3 = arith.constant 0 : index
    %c0_4 = arith.constant 0 : index
    %3 = vector.load %arg4[%c0_3, %c0_4] : memref<6x128xf32, #tpu.memory_space<vmem>>, vector<1x128xf32>
    %cst = arith.constant dense<0.000000e+00> : vector<128x128xf32>
    %4 = tpu.matmul %1, %2, %cst {dimension_numbers = #tpu.dot_dimension_numbers<[1], [0], [0], [1], [0, 0, 1, 1], [], []>} : vector<128x128xbf16>, vector<128x128xbf16>, vector<128x128xf32> -> vector<128x128xf32>
    %5 = vector.broadcast %3 : vector<1x128xf32> to vector<128x128xf32>
    %6 = arith.addf %4, %5 : vector<128x128xf32>
    %cst_5 = arith.constant 0.000000e+00 : f32
    %7 = vector.broadcast %cst_5 : f32 to vector<128x128xf32>
    %8 = arith.maximumf %6, %7 : vector<128x128xf32>
    %9 = arith.truncf %8 : vector<128x128xf32> to vector<128x128xbf16>
    %c0_6 = arith.constant 0 : index
    %c0_7 = arith.constant 0 : index
    %c0_8 = arith.constant 0 : index
    %10 = vector.load %arg3[%c0_6, %c0_7, %c0_8] : memref<5x128x128xbf16, #tpu.memory_space<vmem>>, vector<1x128x128xbf16>
    %11 = vector.shape_cast %10 : vector<1x128x128xbf16> to vector<128x128xbf16>
    %c1 = arith.constant 1 : index
    %c0_9 = arith.constant 0 : index
    %12 = vector.load %arg4[%c1, %c0_9] : memref<6x128xf32, #tpu.memory_space<vmem>>, vector<1x128xf32>
    %cst_10 = arith.constant dense<0.000000e+00> : vector<128x128xf32>
    %13 = tpu.matmul %9, %11, %cst_10 {dimension_numbers = #tpu.dot_dimension_numbers<[1], [0], [0], [1], [0, 0, 1, 1], [], []>} : vector<128x128xbf16>, vector<128x128xbf16>, vector<128x128xf32> -> vector<128x128xf32>
    %14 = vector.broadcast %12 : vector<1x128xf32> to vector<128x128xf32>
    %15 = arith.addf %13, %14 : vector<128x128xf32>
    %cst_11 = arith.constant 0.000000e+00 : f32
    %16 = vector.broadcast %cst_11 : f32 to vector<128x128xf32>
    %17 = arith.maximumf %15, %16 : vector<128x128xf32>
    %18 = arith.truncf %17 : vector<128x128xf32> to vector<128x128xbf16>
    %c1_12 = arith.constant 1 : index
    %c0_13 = arith.constant 0 : index
    %c0_14 = arith.constant 0 : index
    %19 = vector.load %arg3[%c1_12, %c0_13, %c0_14] : memref<5x128x128xbf16, #tpu.memory_space<vmem>>, vector<1x128x128xbf16>
    %20 = vector.shape_cast %19 : vector<1x128x128xbf16> to vector<128x128xbf16>
    %c2 = arith.constant 2 : index
    %c0_15 = arith.constant 0 : index
    %21 = vector.load %arg4[%c2, %c0_15] : memref<6x128xf32, #tpu.memory_space<vmem>>, vector<1x128xf32>
    %cst_16 = arith.constant dense<0.000000e+00> : vector<128x128xf32>
    %22 = tpu.matmul %18, %20, %cst_16 {dimension_numbers = #tpu.dot_dimension_numbers<[1], [0], [0], [1], [0, 0, 1, 1], [], []>} : vector<128x128xbf16>, vector<128x128xbf16>, vector<128x128xf32> -> vector<128x128xf32>
    %23 = vector.broadcast %21 : vector<1x128xf32> to vector<128x128xf32>
    %24 = arith.addf %22, %23 : vector<128x128xf32>
    %cst_17 = arith.constant 0.000000e+00 : f32
    %25 = vector.broadcast %cst_17 : f32 to vector<128x128xf32>
    %26 = arith.subf %25, %24 : vector<128x128xf32>
    %27 = math.exp %26 : vector<128x128xf32>
    %cst_18 = arith.constant 1.000000e+00 : f32
    %28 = vector.broadcast %cst_18 : f32 to vector<128x128xf32>
    %29 = arith.addf %28, %27 : vector<128x128xf32>
    %30 = tpu.reciprocal %29 {approx = true} : vector<128x128xf32> -> vector<128x128xf32>
    %31 = arith.truncf %30 : vector<128x128xf32> to vector<128x128xbf16>
    %c2_19 = arith.constant 2 : index
    %c0_20 = arith.constant 0 : index
    %c0_21 = arith.constant 0 : index
    %32 = vector.load %arg3[%c2_19, %c0_20, %c0_21] : memref<5x128x128xbf16, #tpu.memory_space<vmem>>, vector<1x128x128xbf16>
    %33 = vector.shape_cast %32 : vector<1x128x128xbf16> to vector<128x128xbf16>
    %c3 = arith.constant 3 : index
    %c0_22 = arith.constant 0 : index
    %34 = vector.load %arg4[%c3, %c0_22] : memref<6x128xf32, #tpu.memory_space<vmem>>, vector<1x128xf32>
    %cst_23 = arith.constant dense<0.000000e+00> : vector<128x128xf32>
    %35 = tpu.matmul %31, %33, %cst_23 {dimension_numbers = #tpu.dot_dimension_numbers<[1], [0], [0], [1], [0, 0, 1, 1], [], []>} : vector<128x128xbf16>, vector<128x128xbf16>, vector<128x128xf32> -> vector<128x128xf32>
    %36 = vector.broadcast %34 : vector<1x128xf32> to vector<128x128xf32>
    %37 = arith.addf %35, %36 : vector<128x128xf32>
    %cst_24 = arith.constant 0.000000e+00 : f32
    %38 = vector.broadcast %cst_24 : f32 to vector<128x128xf32>
    %39 = arith.maximumf %37, %38 : vector<128x128xf32>
    %40 = arith.truncf %39 : vector<128x128xf32> to vector<128x128xbf16>
    %c3_25 = arith.constant 3 : index
    %c0_26 = arith.constant 0 : index
    %c0_27 = arith.constant 0 : index
    %41 = vector.load %arg3[%c3_25, %c0_26, %c0_27] : memref<5x128x128xbf16, #tpu.memory_space<vmem>>, vector<1x128x128xbf16>
    %42 = vector.shape_cast %41 : vector<1x128x128xbf16> to vector<128x128xbf16>
    %c4 = arith.constant 4 : index
    %c0_28 = arith.constant 0 : index
    %43 = vector.load %arg4[%c4, %c0_28] : memref<6x128xf32, #tpu.memory_space<vmem>>, vector<1x128xf32>
    %cst_29 = arith.constant dense<0.000000e+00> : vector<128x128xf32>
    %44 = tpu.matmul %40, %42, %cst_29 {dimension_numbers = #tpu.dot_dimension_numbers<[1], [0], [0], [1], [0, 0, 1, 1], [], []>} : vector<128x128xbf16>, vector<128x128xbf16>, vector<128x128xf32> -> vector<128x128xf32>
    %45 = vector.broadcast %43 : vector<1x128xf32> to vector<128x128xf32>
    %46 = arith.addf %44, %45 : vector<128x128xf32>
    %cst_30 = arith.constant 0.000000e+00 : f32
    %47 = vector.broadcast %cst_30 : f32 to vector<128x128xf32>
    %48 = arith.maximumf %46, %47 : vector<128x128xf32>
    %49 = arith.truncf %48 : vector<128x128xf32> to vector<128x128xbf16>
    %c4_31 = arith.constant 4 : index
    %c0_32 = arith.constant 0 : index
    %c0_33 = arith.constant 0 : index
    %50 = vector.load %arg3[%c4_31, %c0_32, %c0_33] : memref<5x128x128xbf16, #tpu.memory_space<vmem>>, vector<1x128x128xbf16>
    %51 = vector.shape_cast %50 : vector<1x128x128xbf16> to vector<128x128xbf16>
    %c5 = arith.constant 5 : index
    %c0_34 = arith.constant 0 : index
    %52 = vector.load %arg4[%c5, %c0_34] : memref<6x128xf32, #tpu.memory_space<vmem>>, vector<1x128xf32>
    %cst_35 = arith.constant dense<0.000000e+00> : vector<128x128xf32>
    %53 = tpu.matmul %49, %51, %cst_35 {dimension_numbers = #tpu.dot_dimension_numbers<[1], [0], [0], [1], [0, 0, 1, 1], [], []>} : vector<128x128xbf16>, vector<128x128xbf16>, vector<128x128xf32> -> vector<128x128xf32>
    %54 = vector.broadcast %52 : vector<1x128xf32> to vector<128x128xf32>
    %55 = arith.addf %53, %54 : vector<128x128xf32>
    %cst_36 = arith.constant 0.000000e+00 : f32
    %56 = vector.broadcast %cst_36 : f32 to vector<128x128xf32>
    %57 = arith.subf %56, %55 : vector<128x128xf32>
    %58 = math.exp %57 : vector<128x128xf32>
    %cst_37 = arith.constant 1.000000e+00 : f32
    %59 = vector.broadcast %cst_37 : f32 to vector<128x128xf32>
    %60 = arith.addf %59, %58 : vector<128x128xf32>
    %61 = tpu.reciprocal %60 {approx = true} : vector<128x128xf32> -> vector<128x128xf32>
    %c32_i32 = arith.constant 32 : i32
    %62 = tpu.dynamic_rotate %61 by %c32_i32 dim 1 : vector<128x128xf32>, i32 -> vector<128x128xf32>
    %63 = tpu.iota {dimensions = array<i32: 1>} : vector<128x128xi32>
    %c32_i32_38 = arith.constant 32 : i32
    %64 = vector.broadcast %c32_i32_38 : i32 to vector<128x128xi32>
    %65 = arith.cmpi slt, %63, %64 : vector<128x128xi32>
    %66 = arith.extf %31 : vector<128x128xbf16> to vector<128x128xf32>
    %67 = arith.select %65, %66, %62 : vector<128x128xi1>, vector<128x128xf32>
    %68 = arith.truncf %67 : vector<128x128xf32> to vector<128x128xbf16>
    %c0_39 = arith.constant 0 : index
    %c0_40 = arith.constant 0 : index
    %69 = vector.load %arg5[%c0_39, %c0_40] : memref<128x128xbf16, #tpu.memory_space<vmem>>, vector<128x128xbf16>
    tpu.vector_store %arg5[%c0_39, %c0_40], %68 {strides = array<i32>} : memref<128x128xbf16, #tpu.memory_space<vmem>>, vector<128x128xbf16>,
    return
  }
  func.func @transform_0(%arg0: i32) -> (i32, i32) {
    %c0_i32 = arith.constant 0 : i32
    %c0_i32_0 = arith.constant 0 : i32
    return %arg0, %c0_i32 : i32, i32
  }
  func.func @transform_1(%arg0: i32) -> (i32, i32) {
    %c0_i32 = arith.constant 0 : i32
    %c0_i32_0 = arith.constant 0 : i32
    %c0_i32_1 = arith.constant 0 : i32
    return %c0_i32, %c0_i32_0 : i32, i32
  }
  func.func @transform_2(%arg0: i32) -> (i32, i32, i32) {
    %c0_i32 = arith.constant 0 : i32
    %c0_i32_0 = arith.constant 0 : i32
    %c0_i32_1 = arith.constant 0 : i32
    %c0_i32_2 = arith.constant 0 : i32
    return %c0_i32, %c0_i32_0, %c0_i32_1 : i32, i32, i32
  }
  func.func @transform_3(%arg0: i32) -> (i32, i32) {
    %c0_i32 = arith.constant 0 : i32
    %c0_i32_0 = arith.constant 0 : i32
    %c0_i32_1 = arith.constant 0 : i32
    return %c0_i32, %c0_i32_0 : i32, i32
  }
  func.func @transform_4(%arg0: i32) -> (i32, i32) {
    %c0_i32 = arith.constant 0 : i32
    %c0_i32_0 = arith.constant 0 : i32
    return %arg0, %c0_i32 : i32, i32
  }
}

</mosaic_0001>

<bundles_post_ra>
// kernel: hierarchical_forward.1
= control target key start
LH: loop header
LB: loop body
LE: loop exit
PB: predicated region body
PF: predicated region fallthrough
CT: control target
= control target key end

     0   :  { %s2448_s15 = smov 0   ;;  %s2783_s0 = inlined_call_operand.vmem [shape: f32[512,128], index: 0, kind: input, shape index: {}]   ;;  %s2784_s1 = inlined_call_operand.vmem [shape: bf16[128,128], index: 1, kind: input, shape index: {}]   ;;  %s2785_s2 = inlined_call_operand.vmem [shape: bf16[5,128,128], index: 2, kind: input, shape index: {}]   ;;  %s2786_s3 = inlined_call_operand.vmem [shape: f32[6,128], index: 3, kind: input, shape index: {}]   ;;  %s2787_s4 = inlined_call_operand.vmem [shape: bf16[512,128], index: 4, kind: output, shape index: {}]  }
   0x1 LB: > { %s1693_s16 = sadd.s32 4294967295, %s2420_s15   ;;  %p1697_p0 = scmp.ge.s32.totalorder %s2420_s15, 1  ;;  %s2420_s15 = sphi %s2448_s15, %s14_s15  }
   0x2   : > { %p163_p1 = scmp.lt.s32.totalorder %s2420_s15, 5 }
   0x4   : > { %p164_p2 = pnand %p1697_p0, %p163_p1 }
   0x5   : > { %v2238_v0 = vld [vmem:[%s2784_s1] sm:$0xff] (!%p164_p2)   ;;  %s1698_s19 = sshll.u32 (!%p164_p2), %s1693_s16, 4  ;;  %v2239_v1 = vld [vmem:[%s2784_s1 + $0x8] sm:$0xff] (!%p164_p2)   ;;  %v2240_v2 = vld [vmem:[%s2784_s1 + $0x10] sm:$0xff] (!%p164_p2)   ;;  %s2422_s8 = smov (!%p164_p2), 32  }
   0x6   : > { %167 = sbr.rel (%p164_p2) target bundleno = 1567 (0x61f), region = 36  ;;  %p190_p3 = scmp.lt.s32.totalorder (!%p164_p2), %s1698_s19, 63  ;;  %1997 = vmatprep.subr.bf16.mxu0 (!%p164_p2), %v2238_v0  ;;  %v2241_v3 = vld [vmem:[%s2784_s1 + $0x18] sm:$0xff] (!%p164_p2)   ;;  %v2242_v7 = vld [vmem:[%s2784_s1 + $0x20] sm:$0xff] (!%p164_p2)   ;;  %v2247_v9 = vld [vmem:[%s2785_s2 + $0x8] sm:$0xff] (!%p164_p2)  }
   0x7   : > { %1998 = vmatpush3.bf16.msra.mxu0 (!%p164_p2), %v2238_v0  ;;  %v2246_v8 = vld [vmem:[%s2785_s2] sm:$0xff] (!%p164_p2)   ;;  %v2243_v10 = vld [vmem:[%s2784_s1 + $0x28] sm:$0xff] (!%p164_p2)   ;;  %v2248_v11 = vld [vmem:[%s2785_s2 + $0x10] sm:$0xff] (!%p164_p2)  }
   0x8   : > { %1999 = vmatprep.subr.bf16.mxu0 (!%p164_p2), %v2239_v1  ;;  %2029 = vmatprep.subr.bf16.mxu1 (!%p164_p2), %v2246_v8  ;;  %v2244_v12 = vld [vmem:[%s2784_s1 + $0x30] sm:$0xff] (!%p164_p2)   ;;  %v2249_v13 = vld [vmem:[%s2785_s2 + $0x18] sm:$0xff] (!%p164_p2)   ;;  %v2250_v15 = vld [vmem:[%s2785_s2 + $0x20] sm:$0xff] (!%p164_p2)  }
   0x9   : > { %2030 = vmatpush3.bf16.msra.mxu1 (!%p164_p2), %v2246_v8  ;;  %v2245_v14 = vld [vmem:[%s2784_s1 + $0x38] sm:$0xff] (!%p164_p2)   ;;  %v2251_v20 = vld [vmem:[%s2785_s2 + $0x28] sm:$0xff] (!%p164_p2)   ;;  %v2252_v38 = vld [vmem:[%s2785_s2 + $0x30] sm:$0xff] (!%p164_p2)  }
   0xa   : > { %2031 = vmatprep.subr.bf16.mxu1 (!%p164_p2), %v2247_v9  ;;  %v2253_v39 = vld [vmem:[%s2785_s2 + $0x38] sm:$0xff] (!%p164_p2)   ;;  %v2254_v40 = vld [vmem:[%s2785_s2 + $0x40] sm:$0xff] (!%p164_p2)   ;;  %v2255_v41 = vld [vmem:[%s2785_s2 + $0x48] sm:$0xff] (!%p164_p2)  }
   0xb   : > { %2000 = vmatpush3.bf16.msra.mxu0 (!%p164_p2), %v2239_v1  ;;  %v2256_v42 = vld [vmem:[%s2785_s2 + $0x50] sm:$0xff] (!%p164_p2)   ;;  %v2257_v43 = vld [vmem:[%s2785_s2 + $0x58] sm:$0xff] (!%p164_p2)   ;;  %v2258_v44 = vld [vmem:[%s2785_s2 + $0x60] sm:$0xff] (!%p164_p2)  }
   0xc   : > { %2001 = vmatprep.subr.bf16.mxu0 (!%p164_p2), %v2240_v2  ;;  %v2259_v45 = vld [vmem:[%s2785_s2 + $0x68] sm:$0xff] (!%p164_p2)   ;;  %v1702_v46 = vld [vmem:[%s2786_s3] ss:$0 sm:$0xff] (!%p164_p2) }
   0xd   : > { %s2789_s19 = smov (!%p190_p3, %s1698_s19), 63  ;;  %2032 = vmatpush3.bf16.msra.mxu1 %v2247_v9 }
   0xe   : > { %s1699_s24 = sshll.u32 %s2789_s19, 3  ;;  %2033 = vmatprep.subr.bf16.mxu1 %v2248_v11  ;;  %s1701_s9 = sshll.u32 %s2789_s19, 2 }
   0xf   : > { %s2471_s27 = scalar_lea.vmem %s2783_s0, %s1699_s24  ;;  %2002 = vmatpush3.bf16.msra.mxu0 %v2240_v2  ;;  %s2738_s12 = scalar_lea.vmem %s2787_s4, %s1701_s9 }
  0x10   : > { %v202_v4 = vld [vmem:[%s2471_s27] sm:$0xff]  ;;  %v203_v5 = vld [vmem:[%s2471_s27 + $0x8] sm:$0xff]  ;;  %2003 = vmatprep.subr.bf16.mxu0 %v2241_v3  ;;  %v204_v16 = vld [vmem:[%s2471_s27 + $0x10] sm:$0xff] }
  0x11   : > { %v218_v6 = vpack.c.bf16 %v203_v5, %v202_v4  ;;  %v205_v17 = vld [vmem:[%s2471_s27 + $0x18] sm:$0xff]  ;;  %2034 = vmatpush3.bf16.msra.mxu1 %v2248_v11  ;;  %v206_v18 = vld [vmem:[%s2471_s27 + $0x20] sm:$0xff]  ;;  %v207_v19 = vld [vmem:[%s2471_s27 + $0x28] sm:$0xff] }
  0x12   : > { %2035 = vmatprep.subr.bf16.mxu1 %v2249_v13  ;;  %v219_v21 = vpack.c.bf16 %v205_v17, %v204_v16  ;;  %v220_v22 = vpack.c.bf16 %v207_v19, %v206_v18  ;;  %v208_v23 = vld [vmem:[%s2471_s27 + $0x30] sm:$0xff]  ;;  %v209_v24 = vld [vmem:[%s2471_s27 + $0x38] sm:$0xff]  ;;  %v210_v25 = vld [vmem:[%s2471_s27 + $0x40] sm:$0xff] }
  0x13   : > { %2013 = vmatprep.mubr.bf16.mxu0 %v218_v6  ;;  %2004 = vmatpush3.bf16.msra.mxu0 %v2241_v3  ;;  %v211_v26 = vld [vmem:[%s2471_s27 + $0x48] sm:$0xff]  ;;  %v221_v27 = vpack.c.bf16 %v209_v24, %v208_v23  ;;  %v212_v29 = vld [vmem:[%s2471_s27 + $0x50] sm:$0xff]  ;;  %v213_v30 = vld [vmem:[%s2471_s27 + $0x58] sm:$0xff] }
  0x14   : > { %2005 = vmatprep.subr.bf16.mxu0 %v2242_v7  ;;  %v222_v28 = vpack.c.bf16 %v211_v26, %v210_v25  ;;  %v214_v31 = vld [vmem:[%s2471_s27 + $0x60] sm:$0xff]  ;;  %v215_v32 = vld [vmem:[%s2471_s27 + $0x68] sm:$0xff]  ;;  %v223_v33 = vpack.c.bf16 %v213_v30, %v212_v29  ;;  %v216_v35 = vld [vmem:[%s2471_s27 + $0x70] sm:$0xff] }
  0x15   : > { %2036 = vmatpush3.bf16.msra.mxu1 %v2249_v13  ;;  %v224_v34 = vpack.c.bf16 %v215_v32, %v214_v31  ;;  %v217_v36 = vld [vmem:[%s2471_s27 + $0x78] sm:$0xff] }
  0x16   : > { %2037 = vmatprep.subr.bf16.mxu1 %v2250_v15  ;;  %v225_v37 = vpack.c.bf16 %v217_v36, %v216_v35 }
  0x17   : > { %2006 = vmatpush3.bf16.msra.mxu0 %v2242_v7 }
  0x18   : > { %2007 = vmatprep.subr.bf16.mxu0 %v2243_v10 }
  0x19   : > { %2038 = vmatpush3.bf16.msra.mxu1 %v2250_v15 }
  0x1a   : > { %2039 = vmatprep.subr.bf16.mxu1 %v2251_v20 }
  0x1b   : > { %2008 = vmatpush3.bf16.msra.mxu0 %v2243_v10 }
  0x1c   : > { %2009 = vmatprep.subr.bf16.mxu0 %v2244_v12 }
  0x1d   : > { %2040 = vmatpush3.bf16.msra.mxu1 %v2251_v20 }
  0x1e   : > { %2041 = vmatprep.subr.bf16.mxu1 %v2252_v38 }
  0x1f   : > { %2010 = vmatpush3.bf16.msra.mxu0 %v2244_v12 }
  0x20   : > { %2011 = vmatprep.subr.bf16.mxu0 %v2245_v14 }
  0x21   : > { %2042 = vmatpush3.bf16.msra.mxu1 %v2252_v38 }
  0x22   : > { %2043 = vmatprep.subr.bf16.mxu1 %v2253_v39 }
  0x23   : > { %2012 = vmatpush3.bf16.msra.mxu0 %v2245_v14 }
  0x24   : > { %2061 = vmatprep.subr.bf16.mxu0 %v2254_v40 }
  0x25   : > { %2044 = vmatpush3.bf16.msra.mxu1 %v2253_v39  ;;  %v2260_v39 = vld [vmem:[%s2785_s2 + $0x70] sm:$0xff]  }
  0x26   : > { %2014 = vmatmul.mubr.bf16.vlgmr.msra.gmra.mrb[0].mxu0 %v219_v21 }
  0x27   : > { %2017 = vmatprep.mubr.bf16.mxu0 %v220_v22  ;;  %2062 = vmatpush3.bf16.msra.mxu0 %v2254_v40  ;;  %v2261_v40 = vld [vmem:[%s2785_s2 + $0x78] sm:$0xff]  }
  0x28   : > { %2063 = vmatprep.subr.bf16.mxu0 %v2255_v41 }
  0x2b   : > { %2064 = vmatpush3.bf16.msra.mxu0 %v2255_v41  ;;  %v1711_v41 = vld [vmem:[%s2786_s3 + $0x1] ss:$0 sm:$0xff] }
  0x2c   : > { %2065 = vmatprep.subr.bf16.mxu0 %v2256_v42 }
  0x2e   : > { %2018 = vmatmul.mubr.bf16.gmra.mrb[4].mxu0 %v221_v27 }
  0x2f   : > { %2021 = vmatprep.mubr.bf16.mxu0 %v222_v28  ;;  %2066 = vmatpush3.bf16.msra.mxu0 %v2256_v42 }
  0x30   : > { %2067 = vmatprep.subr.bf16.mxu0 %v2257_v43 }
  0x33   : > { %2068 = vmatpush3.bf16.msra.mxu0 %v2257_v43 }
  0x34   : > { %2069 = vmatprep.subr.bf16.mxu0 %v2258_v44 }
  0x36   : > { %2022 = vmatmul.mubr.bf16.gmra.mrb[8].mxu0 %v223_v33 }
  0x37   : > { %2025 = vmatprep.mubr.bf16.mxu0 %v224_v34  ;;  %2070 = vmatpush3.bf16.msra.mxu0 %v2258_v44 }
  0x38   : > { %2071 = vmatprep.subr.bf16.mxu0 %v2259_v45 }
  0x3b   : > { %2072 = vmatpush3.bf16.msra.mxu0 %v2259_v45 }
  0x3c   : > { %2073 = vmatprep.subr.bf16.mxu0 %v2260_v39 }
  0x3e   : > { %2026 = vmatmul.mubr.bf16.gmra.mrb[12].mxu0 %v225_v37 }
  0x3f   : > { %2074 = vmatpush3.bf16.msra.mxu0 %v2260_v39  ;;  %v2267_v39 = vld [vmem:[%s2785_s2 + $0xa8] sm:$0xff]  }
  0x40   : > { %2075 = vmatprep.subr.bf16.mxu0 %v2261_v40 }
  0x43   : > { %2076 = vmatpush3.bf16.msra.mxu0 %v2261_v40  ;;  %v2268_v40 = vld [vmem:[%s2785_s2 + $0xb0] sm:$0xff]  }
  0xf9   : > { %v2015_v47 = vpop.f32.mrb[0].mxu0 }
  0xfa   : > { %v338_v48 = vadd.f32 %v2015_v47, %v1702_v46  ;;  %v329_v49 = vpop.f32.mrb[1].mxu0 }
  0xfb   : > { %v330_v50 = vadd.f32 %v1702_v46, %v329_v49  ;;  %v2016_v51 = vpop.f32.mrb[2].mxu0 }
  0xfc   : > { %v341_v52 = vadd.f32 %v2016_v51, %v1702_v46  ;;  %v332_v53 = vpop.f32.mrb[3].mxu0  ;;  %v394_v55 = vmax.f32 %v338_v48, 0.0 }
  0xfd   : > { %v333_v54 = vadd.f32 %v1702_v46, %v332_v53  ;;  %v392_v57 = vmax.f32 %v330_v50, 0.0 }
  0xfe   : > { %v395_v56 = vmax.f32 %v341_v52, 0.0 }
  0xff   : > { %v393_v58 = vmax.f32 %v333_v54, 0.0 }
 0x100   : > { %v409_v59 = vpack.c.bf16 %v395_v56, %v394_v55 }
 0x101   : > { %v2019_v60 = vpop.f32.mrb[4].mxu0  ;;  %v408_v61 = vpack.c.bf16 %v393_v58, %v392_v57 }
 0x102   : > { %v354_v62 = vadd.f32 %v2019_v60, %v1702_v46  ;;  %v345_v63 = vpop.f32.mrb[5].mxu0 }
 0x103   : > { %v346_v0 = vadd.f32 %v1702_v46, %v345_v63  ;;  %v2020_v1 = vpop.f32.mrb[6].mxu0  ;;  %2045 = vmatprep.mubr.bf16.mxu1 %v408_v61 }
 0x104   : > { %v357_v2 = vadd.f32 %v2020_v1, %v1702_v46  ;;  %v348_v3 = vpop.f32.mrb[7].mxu0  ;;  %2046 = vmatmul.mubr.bf16.vlgmr.msra.gmra.mrb[0].mxu1 %v409_v59  ;;  %v398_v5 = vmax.f32 %v354_v62, 0.0 }
 0x105   : > { %v349_v4 = vadd.f32 %v1702_v46, %v348_v3  ;;  %v396_v7 = vmax.f32 %v346_v0, 0.0 }
 0x106   : > { %v399_v6 = vmax.f32 %v357_v2, 0.0 }
 0x107   : > { %v397_v8 = vmax.f32 %v349_v4, 0.0 }
 0x108   : > { %v411_v9 = vpack.c.bf16 %v399_v6, %v398_v5 }
 0x109   : > { %v410_v10 = vpack.c.bf16 %v397_v8, %v396_v7  ;;  %v2023_v11 = vpop.f32.mrb[8].mxu0 }
 0x10a   : > { %v370_v12 = vadd.f32 %v2023_v11, %v1702_v46  ;;  %v361_v13 = vpop.f32.mrb[9].mxu0 }
 0x10b   : > { %v362_v14 = vadd.f32 %v1702_v46, %v361_v13  ;;  %v2024_v15 = vpop.f32.mrb[10].mxu0  ;;  %2049 = vmatprep.mubr.bf16.mxu1 %v410_v10 }
 0x10c   : > { %v373_v16 = vadd.f32 %v2024_v15, %v1702_v46  ;;  %v364_v17 = vpop.f32.mrb[11].mxu0  ;;  %2050 = vmatmul.mubr.bf16.gmra.mrb[4].mxu1 %v411_v9  ;;  %v402_v19 = vmax.f32 %v370_v12, 0.0 }
 0x10d   : > { %v365_v18 = vadd.f32 %v1702_v46, %v364_v17  ;;  %v400_v21 = vmax.f32 %v362_v14, 0.0 }
 0x10e   : > { %v403_v20 = vmax.f32 %v373_v16, 0.0 }
 0x10f   : > { %v401_v22 = vmax.f32 %v365_v18, 0.0 }
 0x110   : > { %v413_v23 = vpack.c.bf16 %v403_v20, %v402_v19 }
 0x111   : > { %v412_v24 = vpack.c.bf16 %v401_v22, %v400_v21  ;;  %v2027_v25 = vpop.f32.mrb[12].mxu0 }
 0x112   : > { %v386_v26 = vadd.f32 %v2027_v25, %v1702_v46  ;;  %v377_v27 = vpop.f32.mrb[13].mxu0 }
 0x113   : > { %v378_v28 = vadd.f32 %v1702_v46, %v377_v27  ;;  %v2028_v29 = vpop.f32.mrb[14].mxu0  ;;  %2053 = vmatprep.mubr.bf16.mxu1 %v412_v24 }
 0x114   : > { %v389_v30 = vadd.f32 %v2028_v29, %v1702_v46  ;;  %v380_v31 = vpop.f32.mrb[15].mxu0  ;;  %2054 = vmatmul.mubr.bf16.gmra.mrb[8].mxu1 %v413_v23  ;;  %v406_v33 = vmax.f32 %v386_v26, 0.0 }
 0x115   : > { %v381_v32 = vadd.f32 %v1702_v46, %v380_v31  ;;  %v404_v35 = vmax.f32 %v378_v28, 0.0 }
 0x116   : > { %v407_v34 = vmax.f32 %v389_v30, 0.0 }
 0x117   : > { %v405_v36 = vmax.f32 %v381_v32, 0.0 }
 0x118   : > { %v415_v37 = vpack.c.bf16 %v407_v34, %v406_v33  ;;  %v2262_v34 = vld [vmem:[%s2785_s2 + $0x80] sm:$0xff]  }
 0x119   : > { %v414_v38 = vpack.c.bf16 %v405_v36, %v404_v35  ;;  %2093 = vmatprep.subr.bf16.mxu1 %v2262_v34  ;;  %v2263_v35 = vld [vmem:[%s2785_s2 + $0x88] sm:$0xff]   ;;  %v2264_v36 = vld [vmem:[%s2785_s2 + $0x90] sm:$0xff]  }
 0x11a   : > { %2094 = vmatpush3.bf16.msra.mxu1 %v2262_v34 }
 0x11b   : > { %2057 = vmatprep.mubr.bf16.mxu1 %v414_v38  ;;  %2095 = vmatprep.subr.bf16.mxu1 %v2263_v35  ;;  %v2266_v38 = vld [vmem:[%s2785_s2 + $0xa0] sm:$0xff]  }
 0x11c   : > { %2058 = vmatmul.mubr.bf16.gmra.mrb[12].mxu1 %v415_v37  ;;  %v2265_v37 = vld [vmem:[%s2785_s2 + $0x98] sm:$0xff]  }
 0x11e   : > { %2096 = vmatpush3.bf16.msra.mxu1 %v2263_v35 }
 0x11f   : > { %2097 = vmatprep.subr.bf16.mxu1 %v2264_v36 }
 0x122   : > { %2098 = vmatpush3.bf16.msra.mxu1 %v2264_v36 }
 0x123   : > { %2099 = vmatprep.subr.bf16.mxu1 %v2265_v37 }
 0x126   : > { %2100 = vmatpush3.bf16.msra.mxu1 %v2265_v37 }
 0x127   : > { %2101 = vmatprep.subr.bf16.mxu1 %v2266_v38 }
 0x12a   : > { %2102 = vmatpush3.bf16.msra.mxu1 %v2266_v38 }
 0x12b   : > { %2103 = vmatprep.subr.bf16.mxu1 %v2267_v39 }
 0x12e   : > { %2104 = vmatpush3.bf16.msra.mxu1 %v2267_v39 }
 0x12f   : > { %2105 = vmatprep.subr.bf16.mxu1 %v2268_v40 }
 0x132   : > { %2106 = vmatpush3.bf16.msra.mxu1 %v2268_v40 }
 0x1d7   : > { %v2047_v42 = vpop.f32.mrb[0].mxu1 }
 0x1d8   : > { %v528_v43 = vadd.f32 %v2047_v42, %v1711_v41  ;;  %v519_v44 = vpop.f32.mrb[1].mxu1  ;;  %v2270_v42 = vld [vmem:[%s2785_s2 + $0xc0] sm:$0xff]  }
 0x1d9   : > { %v520_v45 = vadd.f32 %v1711_v41, %v519_v44  ;;  %v2048_v46 = vpop.f32.mrb[2].mxu1  ;;  %2125 = vmatprep.subr.bf16.mxu0 %v2270_v42  ;;  %v2272_v44 = vld [vmem:[%s2785_s2 + $0xd0] sm:$0xff]  }
 0x1da   : > { %v531_v47 = vadd.f32 %v2048_v46, %v1711_v41  ;;  %v522_v48 = vpop.f32.mrb[3].mxu1  ;;  %v584_v50 = vmax.f32 %v528_v43, 0.0  ;;  %v2271_v43 = vld [vmem:[%s2785_s2 + $0xc8] sm:$0xff]   ;;  %v2274_v46 = vld [vmem:[%s2785_s2 + $0xe0] sm:$0xff]  }
 0x1db   : > { %v523_v49 = vadd.f32 %v1711_v41, %v522_v48  ;;  %v582_v52 = vmax.f32 %v520_v45, 0.0  ;;  %v2273_v45 = vld [vmem:[%s2785_s2 + $0xd8] sm:$0xff]   ;;  %v2603_v48 = vld [vmem:[%s2786_s3 + $0x2] ss:$0 sm:$0xff] }
 0x1dc   : > { %v585_v51 = vmax.f32 %v531_v47, 0.0  ;;  %v2275_v47 = vld [vmem:[%s2785_s2 + $0xe8] sm:$0xff]  }
 0x1dd   : > { %v583_v53 = vmax.f32 %v523_v49, 0.0 }
 0x1de   : > { %v599_v54 = vpack.c.bf16 %v585_v51, %v584_v50 }
 0x1df   : > { %v598_v55 = vpack.c.bf16 %v583_v53, %v582_v52  ;;  %v2051_v56 = vpop.f32.mrb[4].mxu1 }
 0x1e0   : > { %v544_v57 = vadd.f32 %v2051_v56, %v1711_v41  ;;  %v535_v58 = vpop.f32.mrb[5].mxu1 }
 0x1e1   : > { %v536_v59 = vadd.f32 %v1711_v41, %v535_v58  ;;  %v2052_v60 = vpop.f32.mrb[6].mxu1  ;;  %2077 = vmatprep.mubr.bf16.mxu0 %v598_v55 }
 0x1e2   : > { %v547_v61 = vadd.f32 %v2052_v60, %v1711_v41  ;;  %v538_v62 = vpop.f32.mrb[7].mxu1  ;;  %2078 = vmatmul.mubr.bf16.vlgmr.msra.gmra.mrb[16].mxu0 %v599_v54  ;;  %v588_v0 = vmax.f32 %v544_v57, 0.0 }
 0x1e3   : > { %v539_v63 = vadd.f32 %v1711_v41, %v538_v62  ;;  %v586_v2 = vmax.f32 %v536_v59, 0.0  ;;  %2126 = vmatpush3.bf16.msra.mxu0 %v2270_v42 }
 0x1e4   : > { %v589_v1 = vmax.f32 %v547_v61, 0.0  ;;  %2127 = vmatprep.subr.bf16.mxu0 %v2271_v43 }
 0x1e5   : > { %v587_v3 = vmax.f32 %v539_v63, 0.0 }
 0x1e6   : > { %v601_v4 = vpack.c.bf16 %v589_v1, %v588_v0 }
 0x1e7   : > { %v600_v5 = vpack.c.bf16 %v587_v3, %v586_v2  ;;  %v2055_v6 = vpop.f32.mrb[8].mxu1  ;;  %2128 = vmatpush3.bf16.msra.mxu0 %v2271_v43 }
 0x1e8   : > { %v560_v7 = vadd.f32 %v2055_v6, %v1711_v41  ;;  %v551_v8 = vpop.f32.mrb[9].mxu1  ;;  %2129 = vmatprep.subr.bf16.mxu0 %v2272_v44 }
 0x1e9   : > { %v552_v9 = vadd.f32 %v1711_v41, %v551_v8  ;;  %v2056_v10 = vpop.f32.mrb[10].mxu1  ;;  %2081 = vmatprep.mubr.bf16.mxu0 %v600_v5 }
 0x1ea   : > { %v563_v11 = vadd.f32 %v2056_v10, %v1711_v41  ;;  %v554_v12 = vpop.f32.mrb[11].mxu1  ;;  %2082 = vmatmul.mubr.bf16.gmra.mrb[20].mxu0 %v601_v4  ;;  %v592_v14 = vmax.f32 %v560_v7, 0.0 }
 0x1eb   : > { %v555_v13 = vadd.f32 %v1711_v41, %v554_v12  ;;  %v590_v16 = vmax.f32 %v552_v9, 0.0  ;;  %2130 = vmatpush3.bf16.msra.mxu0 %v2272_v44 }
 0x1ec   : > { %v593_v15 = vmax.f32 %v563_v11, 0.0  ;;  %2131 = vmatprep.subr.bf16.mxu0 %v2273_v45 }
 0x1ed   : > { %v591_v17 = vmax.f32 %v555_v13, 0.0 }
 0x1ee   : > { %v603_v18 = vpack.c.bf16 %v593_v15, %v592_v14 }
 0x1ef   : > { %v602_v19 = vpack.c.bf16 %v591_v17, %v590_v16  ;;  %v2059_v20 = vpop.f32.mrb[12].mxu1  ;;  %2132 = vmatpush3.bf16.msra.mxu0 %v2273_v45 }
 0x1f0   : > { %v576_v21 = vadd.f32 %v2059_v20, %v1711_v41  ;;  %v567_v22 = vpop.f32.mrb[13].mxu1  ;;  %2133 = vmatprep.subr.bf16.mxu0 %v2274_v46 }
 0x1f1   : > { %v568_v23 = vadd.f32 %v1711_v41, %v567_v22  ;;  %v2060_v24 = vpop.f32.mrb[14].mxu1  ;;  %2085 = vmatprep.mubr.bf16.mxu0 %v602_v19 }
 0x1f2   : > { %v579_v25 = vadd.f32 %v2060_v24, %v1711_v41  ;;  %v570_v26 = vpop.f32.mrb[15].mxu1  ;;  %2086 = vmatmul.mubr.bf16.gmra.mrb[24].mxu0 %v603_v18  ;;  %v596_v28 = vmax.f32 %v576_v21, 0.0 }
 0x1f3   : > { %v571_v27 = vadd.f32 %v1711_v41, %v570_v26  ;;  %v594_v30 = vmax.f32 %v568_v23, 0.0  ;;  %v2269_v41 = vld [vmem:[%s2785_s2 + $0xb8] sm:$0xff]   ;;  %2134 = vmatpush3.bf16.msra.mxu0 %v2274_v46 }
 0x1f4   : > { %v597_v29 = vmax.f32 %v579_v25, 0.0  ;;  %2107 = vmatprep.subr.bf16.mxu1 %v2269_v41  ;;  %2135 = vmatprep.subr.bf16.mxu0 %v2275_v47 }
 0x1f5   : > { %v595_v31 = vmax.f32 %v571_v27, 0.0  ;;  %2108 = vmatpush3.bf16.msra.mxu1 %v2269_v41 }
 0x1f6   : > { %v605_v32 = vpack.c.bf16 %v597_v29, %v596_v28 }
 0x1f7   : > { %v604_v33 = vpack.c.bf16 %v595_v31, %v594_v30  ;;  %2136 = vmatpush3.bf16.msra.mxu0 %v2275_v47 }
 0x1f9   : > { %2089 = vmatprep.mubr.bf16.mxu0 %v604_v33 }
 0x1fa   : > { %2090 = vmatmul.mubr.bf16.gmra.mrb[28].mxu0 %v605_v32 }
 0x2b5   : > { %v2079_v49 = vpop.f32.mrb[16].mxu0 }
 0x2b6   : > { %v719_v50 = vadd.f32 %v2079_v49, %v2603_v48  ;;  %v710_v51 = vpop.f32.mrb[17].mxu0 }
 0x2b7   : > { %v711_v52 = vadd.f32 %v2603_v48, %v710_v51  ;;  %v2080_v53 = vpop.f32.mrb[18].mxu0 }
 0x2b8   : > { %v775_v54 = vsub.f32 0.0, %v719_v50  ;;  %v722_v55 = vadd.f32 %v2080_v53, %v2603_v48  ;;  %v713_v56 = vpop.f32.mrb[19].mxu0 }
 0x2b9   : > { %v773_v57 = vsub.f32 0.0, %v711_v52  ;;  %v714_v58 = vadd.f32 %v2603_v48, %v713_v56 }
 0x2ba   : > { %v793_v59 = vmul.f32 1.442695, %v775_v54  ;;  %v776_v60 = vsub.f32 0.0, %v722_v55 }
 0x2bb   : > { %v789_v61 = vmul.f32 1.442695, %v773_v57  ;;  %v774_v62 = vsub.f32 0.0, %v714_v58 }
 0x2bc   : > { %2286 = vpow2.f32 %v793_v59  ;;  %v795_v63 = vmul.f32 1.442695, %v776_v60 }
 0x2bd   : > { %2288 = vpow2.f32 %v789_v61  ;;  %v791_v0 = vmul.f32 1.442695, %v774_v62  ;;  %v2083_v1 = vpop.f32.mrb[20].mxu0 }
 0x2be   : > { %2290 = vpow2.f32 %v795_v63  ;;  %v735_v2 = vadd.f32 %v2083_v1, %v2603_v48  ;;  %v726_v3 = vpop.f32.mrb[21].mxu0 }
 0x2bf   : > { %2292 = vpow2.f32 %v791_v0  ;;  %v727_v4 = vadd.f32 %v2603_v48, %v726_v3  ;;  %v2084_v5 = vpop.f32.mrb[22].mxu0 }
 0x2c0   : > { %v779_v6 = vsub.f32 0.0, %v735_v2  ;;  %v738_v7 = vadd.f32 %v2084_v5, %v2603_v48  ;;  %v729_v8 = vpop.f32.mrb[23].mxu0 }
 0x2c1   : > { %v777_v9 = vsub.f32 0.0, %v727_v4  ;;  %v730_v10 = vadd.f32 %v2603_v48, %v729_v8 }
 0x2c2   : > { %v801_v11 = vmul.f32 1.442695, %v779_v6  ;;  %v780_v12 = vsub.f32 0.0, %v738_v7 }
 0x2c3   : > { %v797_v13 = vmul.f32 1.442695, %v777_v9  ;;  %v778_v14 = vsub.f32 0.0, %v730_v10 }
 0x2c4   : > { %2294 = vpow2.f32 %v801_v11  ;;  %v803_v15 = vmul.f32 1.442695, %v780_v12 }
 0x2c5   : > { %2296 = vpow2.f32 %v797_v13  ;;  %v799_v16 = vmul.f32 1.442695, %v778_v14  ;;  %v2087_v17 = vpop.f32.mrb[24].mxu0 }
 0x2c6   : > { %v2287_v18 = vpop.eup %2286  ;;  %2298 = vpow2.f32 %v803_v15  ;;  %v751_v19 = vadd.f32 %v2087_v17, %v2603_v48  ;;  %v742_v20 = vpop.f32.mrb[25].mxu0 }
 0x2c7   : > { %v2289_v21 = vpop.eup %2288  ;;  %v823_v22 = vadd.f32 1.0, %v2287_v18  ;;  %2300 = vpow2.f32 %v799_v16  ;;  %v743_v23 = vadd.f32 %v2603_v48, %v742_v20  ;;  %v2088_v24 = vpop.f32.mrb[26].mxu0 }
 0x2c8   : > { %v2291_v25 = vpop.eup %2290  ;;  %v821_v26 = vadd.f32 1.0, %v2289_v21  ;;  %v783_v27 = vsub.f32 0.0, %v751_v19  ;;  %v754_v28 = vadd.f32 %v2088_v24, %v2603_v48  ;;  %v745_v29 = vpop.f32.mrb[27].mxu0 }
 0x2c9   : > { %v2293_v30 = vpop.eup %2292  ;;  %2302 = vrcp.f32 %v823_v22  ;;  %v824_v31 = vadd.f32 1.0, %v2291_v25  ;;  %v781_v32 = vsub.f32 0.0, %v743_v23  ;;  %v746_v33 = vadd.f32 %v2603_v48, %v745_v29 }
 0x2ca   : > { %2304 = vrcp.f32 %v821_v26  ;;  %v822_v34 = vadd.f32 1.0, %v2293_v30  ;;  %v809_v35 = vmul.f32 1.442695, %v783_v27  ;;  %v784_v36 = vsub.f32 0.0, %v754_v28 }
 0x2cb   : > { %2306 = vrcp.f32 %v824_v31  ;;  %v805_v37 = vmul.f32 1.442695, %v781_v32  ;;  %v782_v38 = vsub.f32 0.0, %v746_v33 }
 0x2cc   : > { %2308 = vrcp.f32 %v822_v34  ;;  %v811_v39 = vmul.f32 1.442695, %v784_v36 }
 0x2cd   : > { %2310 = vpow2.f32 %v809_v35  ;;  %v807_v40 = vmul.f32 1.442695, %v782_v38  ;;  %v2091_v41 = vpop.f32.mrb[28].mxu0 }
 0x2ce   : > { %v2295_v42 = vpop.eup %2294  ;;  %2312 = vpow2.f32 %v805_v37  ;;  %v767_v43 = vadd.f32 %v2091_v41, %v2603_v48  ;;  %v758_v44 = vpop.f32.mrb[29].mxu0  ;;  %v2276_v41 = vld [vmem:[%s2785_s2 + $0xf0] sm:$0xff]  }
 0x2cf   : > { %v2297_v45 = vpop.eup %2296  ;;  %v827_v46 = vadd.f32 1.0, %v2295_v42  ;;  %2314 = vpow2.f32 %v811_v39  ;;  %v759_v47 = vadd.f32 %v2603_v48, %v758_v44  ;;  %v2092_v49 = vpop.f32.mrb[30].mxu0  ;;  %2137 = vmatprep.subr.bf16.mxu0 %v2276_v41  ;;  %v2277_v42 = vld [vmem:[%s2785_s2 + $0xf8] sm:$0xff]   ;;  %v2279_v44 = vld [vmem:[%s2785_s2 + $0x108] sm:$0xff]  }
 0x2d0   : > { %v2299_v50 = vpop.eup %2298  ;;  %v825_v51 = vadd.f32 1.0, %v2297_v45  ;;  %2316 = vpow2.f32 %v807_v40  ;;  %v787_v52 = vsub.f32 0.0, %v767_v43  ;;  %v770_v53 = vadd.f32 %v2092_v49, %v2603_v48  ;;  %v761_v54 = vpop.f32.mrb[31].mxu0  ;;  %2138 = vmatpush3.bf16.msra.mxu0 %v2276_v41  ;;  %v2278_v43 = vld [vmem:[%s2785_s2 + $0x100] sm:$0xff]   ;;  %v2280_v45 = vld [vmem:[%s2785_s2 + $0x110] sm:$0xff]   ;;  %v2283_v49 = vld [vmem:[%s2785_s2 + $0x128] sm:$0xff]  }
 0x2d1   : > { %v2301_v55 = vpop.eup %2300  ;;  %2318 = vrcp.f32 %v827_v46  ;;  %v828_v56 = vadd.f32 1.0, %v2299_v50  ;;  %v785_v57 = vsub.f32 0.0, %v759_v47  ;;  %v762_v58 = vadd.f32 %v2603_v48, %v761_v54  ;;  %2139 = vmatprep.subr.bf16.mxu0 %v2277_v42  ;;  %2157 = vmatprep.subr.bf16.mxu1 %v2278_v43  ;;  %v2281_v46 = vld [vmem:[%s2785_s2 + $0x118] sm:$0xff]   ;;  %v2282_v47 = vld [vmem:[%s2785_s2 + $0x120] sm:$0xff]  }
 0x2d2   : > { %2320 = vrcp.f32 %v825_v51  ;;  %v826_v59 = vadd.f32 1.0, %v2301_v55  ;;  %v817_v60 = vmul.f32 1.442695, %v787_v52  ;;  %v788_v61 = vsub.f32 0.0, %v770_v53  ;;  %v1761_v50 = vld [vmem:[%s2786_s3 + $0x3] ss:$0 sm:$0xff] }
 0x2d3   : > { %v2621_v62 = vpop.eup %2302  ;;  %2322 = vrcp.f32 %v828_v56  ;;  %v813_v63 = vmul.f32 1.442695, %v785_v57  ;;  %v786_v0 = vsub.f32 0.0, %v762_v58 }
 0x2d4   : > { %v2623_v1 = vpop.eup %2304  ;;  %2324 = vrcp.f32 %v826_v59  ;;  %v819_v2 = vmul.f32 1.442695, %v788_v61  ;;  %2140 = vmatpush3.bf16.msra.mxu0 %v2277_v42 }
 0x2d5   : > { %v2625_v3 = vpop.eup %2306  ;;  %2326 = vpow2.f32 %v817_v60  ;;  %v815_v4 = vmul.f32 1.442695, %v786_v0 }
 0x2d6   : > { %v2627_v5 = vpop.eup %2308  ;;  %2328 = vpow2.f32 %v813_v63  ;;  %v854_v8 = vpack.c.bf16 %v2625_v3, %v2621_v62 }
 0x2d7   : > { %v2311_v48 = vpop.eup %2310  ;;  %2330 = vpow2.f32 %v819_v2  ;;  %v853_v6 = vpack.c.bf16 %v2627_v5, %v2623_v1 }
 0x2d8   : > { %v2313_v7 = vpop.eup %2312  ;;  %2332 = vpow2.f32 %v815_v4  ;;  %v831_v12 = vadd.f32 1.0, %v2311_v48 }
 0x2d9   : > { %v2315_v9 = vpop.eup %2314  ;;  %v829_v10 = vadd.f32 1.0, %v2313_v7  ;;  %2109 = vmatprep.mubr.bf16.mxu1 %v853_v6 }
 0x2da   : > { %v2317_v11 = vpop.eup %2316  ;;  %v832_v13 = vadd.f32 1.0, %v2315_v9  ;;  %2110 = vmatmul.mubr.bf16.vlgmr.msra.gmra.mrb[16].mxu1 %v854_v8 }
 0x2db   : > { %v2633_v14 = vpop.eup %2318  ;;  %2334 = vrcp.f32 %v829_v10  ;;  %v830_v15 = vadd.f32 1.0, %v2317_v11  ;;  %2158 = vmatpush3.bf16.msra.mxu1 %v2278_v43 }
 0x2dc   : > { %v2635_v16 = vpop.eup %2320  ;;  %2336 = vrcp.f32 %v832_v13  ;;  %2159 = vmatprep.subr.bf16.mxu1 %v2279_v44 }
 0x2dd   : > { %v2637_v17 = vpop.eup %2322  ;;  %2338 = vrcp.f32 %v830_v15 }
 0x2de   : > { %v2639_v18 = vpop.eup %2324  ;;  %2340 = vrcp.f32 %v831_v12  ;;  %v856_v22 = vpack.c.bf16 %v2637_v17, %v2633_v14 }
 0x2df   : > { %v2327_v19 = vpop.eup %2326  ;;  %v855_v20 = vpack.c.bf16 %v2639_v18, %v2635_v16  ;;  %2160 = vmatpush3.bf16.msra.mxu1 %v2279_v44 }
 0x2e0   : > { %v2329_v21 = vpop.eup %2328  ;;  %v835_v26 = vadd.f32 1.0, %v2327_v19  ;;  %2161 = vmatprep.subr.bf16.mxu1 %v2280_v45 }
 0x2e1   : > { %v2331_v23 = vpop.eup %2330  ;;  %v833_v24 = vadd.f32 1.0, %v2329_v21  ;;  %2113 = vmatprep.mubr.bf16.mxu1 %v855_v20 }
 0x2e2   : > { %v2333_v25 = vpop.eup %2332  ;;  %v836_v27 = vadd.f32 1.0, %v2331_v23  ;;  %2114 = vmatmul.mubr.bf16.gmra.mrb[20].mxu1 %v856_v22 }
 0x2e3   : > { %2342 = vrcp.f32 %v833_v24  ;;  %v834_v28 = vadd.f32 1.0, %v2333_v25  ;;  %2162 = vmatpush3.bf16.msra.mxu1 %v2280_v45 }
 0x2e4   : > { %2344 = vrcp.f32 %v836_v27  ;;  %2163 = vmatprep.subr.bf16.mxu1 %v2281_v46 }
 0x2e5   : > { %v2645_v29 = vpop.eup %2334  ;;  %2346 = vrcp.f32 %v834_v28 }
 0x2e6   : > { %v2647_v30 = vpop.eup %2336  ;;  %2348 = vrcp.f32 %v835_v26 }
 0x2e7   : > { %v2649_v31 = vpop.eup %2338  ;;  %2164 = vmatpush3.bf16.msra.mxu1 %v2281_v46 }
 0x2e8   : > { %v2651_v32 = vpop.eup %2340  ;;  %v857_v33 = vpack.c.bf16 %v2649_v31, %v2645_v29  ;;  %2165 = vmatprep.subr.bf16.mxu1 %v2282_v47 }
 0x2e9   : > { %v858_v34 = vpack.c.bf16 %v2647_v30, %v2651_v32 }
 0x2ea   : > { %2117 = vmatprep.mubr.bf16.mxu1 %v857_v33 }
 0x2eb   : > { %2118 = vmatmul.mubr.bf16.gmra.mrb[24].mxu1 %v858_v34 }
 0x2ec   : > { %2166 = vmatpush3.bf16.msra.mxu1 %v2282_v47 }
 0x2ed   : > { %v2657_v35 = vpop.eup %2342  ;;  %2167 = vmatprep.subr.bf16.mxu1 %v2283_v49 }
 0x2ee   : > { %v2659_v36 = vpop.eup %2344 }
 0x2ef   : > { %v2661_v37 = vpop.eup %2346 }
 0x2f0   : > { %v2663_v38 = vpop.eup %2348  ;;  %v859_v39 = vpack.c.bf16 %v2661_v37, %v2657_v35  ;;  %2168 = vmatpush3.bf16.msra.mxu1 %v2283_v49 }
 0x2f1   : > { %v860_v40 = vpack.c.bf16 %v2659_v36, %v2663_v38 }
 0x2f2   : > { %2121 = vmatprep.mubr.bf16.mxu1 %v859_v39 }
 0x2f3   : > { %2122 = vmatmul.mubr.bf16.gmra.mrb[28].mxu1 %v860_v40 }
 0x3ad   : > { %v2111_v51 = vpop.f32.mrb[16].mxu1 }
 0x3ae   : > { %v974_v52 = vadd.f32 %v2111_v51, %v1761_v50  ;;  %v965_v53 = vpop.f32.mrb[17].mxu1 }
 0x3af   : > { %v966_v54 = vadd.f32 %v1761_v50, %v965_v53  ;;  %v2112_v55 = vpop.f32.mrb[18].mxu1 }
 0x3b0   : > { %v977_v56 = vadd.f32 %v2112_v55, %v1761_v50  ;;  %v968_v57 = vpop.f32.mrb[19].mxu1  ;;  %v1030_v59 = vmax.f32 %v974_v52, 0.0 }
 0x3b1   : > { %v969_v58 = vadd.f32 %v1761_v50, %v968_v57  ;;  %v1028_v61 = vmax.f32 %v966_v54, 0.0 }
 0x3b2   : > { %v1031_v60 = vmax.f32 %v977_v56, 0.0 }
 0x3b3   : > { %v1029_v63 = vmax.f32 %v969_v58, 0.0 }
 0x3b4   : > { %v1045_v0 = vpack.c.bf16 %v1031_v60, %v1030_v59  ;;  %v2284_v60 = vld [vmem:[%s2785_s2 + $0x130] sm:$0xff]  }
 0x3b5   : > { %v1044_v2 = vpack.c.bf16 %v1029_v63, %v1028_v61  ;;  %v2115_v4 = vpop.f32.mrb[20].mxu1  ;;  %2169 = vmatprep.subr.bf16.mxu1 %v2284_v60  ;;  %v2285_v61 = vld [vmem:[%s2785_s2 + $0x138] sm:$0xff]  }
 0x3b6   : > { %v990_v48 = vadd.f32 %v2115_v4, %v1761_v50  ;;  %v981_v6 = vpop.f32.mrb[21].mxu1  ;;  %2170 = vmatpush3.bf16.msra.mxu1 %v2284_v60 }
 0x3b7   : > { %v982_v7 = vadd.f32 %v1761_v50, %v981_v6  ;;  %v2116_v8 = vpop.f32.mrb[22].mxu1  ;;  %2141 = vmatprep.mubr.bf16.mxu0 %v1044_v2  ;;  %2171 = vmatprep.subr.bf16.mxu1 %v2285_v61 }
 0x3b8   : > { %v993_v9 = vadd.f32 %v2116_v8, %v1761_v50  ;;  %v984_v10 = vpop.f32.mrb[23].mxu1  ;;  %2142 = vmatmul.mubr.bf16.vlgmr.msra.gmra.mrb[32].mxu0 %v1045_v0  ;;  %v1034_v12 = vmax.f32 %v990_v48, 0.0 }
 0x3b9   : > { %v985_v11 = vadd.f32 %v1761_v50, %v984_v10  ;;  %v1032_v15 = vmax.f32 %v982_v7, 0.0 }
 0x3ba   : > { %v1035_v13 = vmax.f32 %v993_v9, 0.0  ;;  %2172 = vmatpush3.bf16.msra.mxu1 %v2285_v61 }
 0x3bb   : > { %v1033_v19 = vmax.f32 %v985_v11, 0.0 }
 0x3bc   : > { %v1047_v20 = vpack.c.bf16 %v1035_v13, %v1034_v12 }
 0x3bd   : > { %v1046_v21 = vpack.c.bf16 %v1033_v19, %v1032_v15 }
 0x3be   : > { %v2119_v22 = vpop.f32.mrb[24].mxu1 }
 0x3bf   : > { %v1006_v23 = vadd.f32 %v2119_v22, %v1761_v50  ;;  %v997_v24 = vpop.f32.mrb[25].mxu1  ;;  %2145 = vmatprep.mubr.bf16.mxu0 %v1046_v21 }
 0x3c0   : > { %v998_v25 = vadd.f32 %v1761_v50, %v997_v24  ;;  %v2120_v26 = vpop.f32.mrb[26].mxu1  ;;  %2146 = vmatmul.mubr.bf16.gmra.mrb[36].mxu0 %v1047_v20 }
 0x3c1   : > { %v1009_v27 = vadd.f32 %v2120_v26, %v1761_v50  ;;  %v1000_v28 = vpop.f32.mrb[27].mxu1  ;;  %v1038_v34 = vmax.f32 %v1006_v23, 0.0 }
 0x3c2   : > { %v1001_v33 = vadd.f32 %v1761_v50, %v1000_v28  ;;  %v1036_v40 = vmax.f32 %v998_v25, 0.0 }
 0x3c3   : > { %v1039_v39 = vmax.f32 %v1009_v27, 0.0 }
 0x3c4   : > { %v1037_v41 = vmax.f32 %v1001_v33, 0.0 }
 0x3c5   : > { %v1049_v42 = vpack.c.bf16 %v1039_v39, %v1038_v34 }
 0x3c6   : > { %v1048_v43 = vpack.c.bf16 %v1037_v41, %v1036_v40  ;;  %v2123_v44 = vpop.f32.mrb[28].mxu1 }
 0x3c7   : > { %v1022_v45 = vadd.f32 %v2123_v44, %v1761_v50  ;;  %v1013_v46 = vpop.f32.mrb[29].mxu1 }
 0x3c8   : > { %v1014_v47 = vadd.f32 %v1761_v50, %v1013_v46  ;;  %v2124_v49 = vpop.f32.mrb[30].mxu1  ;;  %2149 = vmatprep.mubr.bf16.mxu0 %v1048_v43 }
 0x3c9   : > { %v1025_v51 = vadd.f32 %v2124_v49, %v1761_v50  ;;  %v1016_v52 = vpop.f32.mrb[31].mxu1  ;;  %2150 = vmatmul.mubr.bf16.gmra.mrb[40].mxu0 %v1049_v42  ;;  %v1042_v54 = vmax.f32 %v1022_v45, 0.0 }
 0x3ca   : > { %v1017_v53 = vadd.f32 %v1761_v50, %v1016_v52  ;;  %v1040_v56 = vmax.f32 %v1014_v47, 0.0  ;;  %v1786_v50 = vld [vmem:[%s2786_s3 + $0x4] ss:$0 sm:$0xff] }
 0x3cb   : > { %v1043_v55 = vmax.f32 %v1025_v51, 0.0 }
 0x3cc   : > { %v1041_v57 = vmax.f32 %v1017_v53, 0.0 }
 0x3cd   : > { %v1051_v58 = vpack.c.bf16 %v1043_v55, %v1042_v54 }
 0x3ce   : > { %v1050_v59 = vpack.c.bf16 %v1041_v57, %v1040_v56 }
 0x3d0   : > { %2153 = vmatprep.mubr.bf16.mxu0 %v1050_v59 }
 0x3d1   : > { %2154 = vmatmul.mubr.bf16.gmra.mrb[44].mxu0 %v1051_v58 }
 0x48b   : > { %v2143_v63 = vpop.f32.mrb[32].mxu0 }
 0x48c   : > { %v1165_v0 = vadd.f32 %v2143_v63, %v1786_v50  ;;  %v1156_v2 = vpop.f32.mrb[33].mxu0 }
 0x48d   : > { %v1157_v4 = vadd.f32 %v1786_v50, %v1156_v2  ;;  %v2144_v48 = vpop.f32.mrb[34].mxu0 }
 0x48e   : > { %v1168_v6 = vadd.f32 %v2144_v48, %v1786_v50  ;;  %v1159_v7 = vpop.f32.mrb[35].mxu0  ;;  %v1221_v9 = vmax.f32 %v1165_v0, 0.0 }
 0x48f   : > { %v1160_v8 = vadd.f32 %v1786_v50, %v1159_v7  ;;  %v1219_v11 = vmax.f32 %v1157_v4, 0.0 }
 0x490   : > { %v1222_v10 = vmax.f32 %v1168_v6, 0.0 }
 0x491   : > { %v1220_v12 = vmax.f32 %v1160_v8, 0.0 }
 0x492   : > { %v1236_v13 = vpack.c.bf16 %v1222_v10, %v1221_v9  ;;  %v2708_v10 = vld [vmem:[%s2786_s3 + $0x5] ss:$0 sm:$0xff] }
 0x493   : > { %v1235_v15 = vpack.c.bf16 %v1220_v12, %v1219_v11  ;;  %v2147_v19 = vpop.f32.mrb[36].mxu0 }
 0x494   : > { %v1181_v20 = vadd.f32 %v2147_v19, %v1786_v50  ;;  %v1172_v21 = vpop.f32.mrb[37].mxu0 }
 0x495   : > { %v1173_v22 = vadd.f32 %v1786_v50, %v1172_v21  ;;  %v2148_v23 = vpop.f32.mrb[38].mxu0  ;;  %2173 = vmatprep.mubr.bf16.mxu1 %v1235_v15 }
 0x496   : > { %v1184_v24 = vadd.f32 %v2148_v23, %v1786_v50  ;;  %v1175_v25 = vpop.f32.mrb[39].mxu0  ;;  %2174 = vmatmul.mubr.bf16.vlgmr.msra.gmra.mrb[32].mxu1 %v1236_v13  ;;  %v1225_v27 = vmax.f32 %v1181_v20, 0.0 }
 0x497   : > { %v1176_v26 = vadd.f32 %v1786_v50, %v1175_v25  ;;  %v1223_v33 = vmax.f32 %v1173_v22, 0.0 }
 0x498   : > { %v1226_v28 = vmax.f32 %v1184_v24, 0.0 }
 0x499   : > { %v1224_v34 = vmax.f32 %v1176_v26, 0.0 }
 0x49a   : > { %v1238_v39 = vpack.c.bf16 %v1226_v28, %v1225_v27 }
 0x49b   : > { %v1237_v40 = vpack.c.bf16 %v1224_v34, %v1223_v33 }
 0x49c   : > { %v2151_v41 = vpop.f32.mrb[40].mxu0 }
 0x49d   : > { %v1197_v42 = vadd.f32 %v2151_v41, %v1786_v50  ;;  %v1188_v43 = vpop.f32.mrb[41].mxu0  ;;  %2177 = vmatprep.mubr.bf16.mxu1 %v1237_v40 }
 0x49e   : > { %v1189_v44 = vadd.f32 %v1786_v50, %v1188_v43  ;;  %v2152_v45 = vpop.f32.mrb[42].mxu0  ;;  %2178 = vmatmul.mubr.bf16.gmra.mrb[36].mxu1 %v1238_v39 }
 0x49f   : > { %v1200_v46 = vadd.f32 %v2152_v45, %v1786_v50  ;;  %v1191_v47 = vpop.f32.mrb[43].mxu0  ;;  %v1229_v51 = vmax.f32 %v1197_v42, 0.0 }
 0x4a0   : > { %v1192_v49 = vadd.f32 %v1786_v50, %v1191_v47  ;;  %v1227_v53 = vmax.f32 %v1189_v44, 0.0 }
 0x4a1   : > { %v1230_v52 = vmax.f32 %v1200_v46, 0.0 }
 0x4a2   : > { %v1228_v54 = vmax.f32 %v1192_v49, 0.0 }
 0x4a3   : > { %v1240_v55 = vpack.c.bf16 %v1230_v52, %v1229_v51 }
 0x4a4   : > { %v1239_v56 = vpack.c.bf16 %v1228_v54, %v1227_v53  ;;  %v2155_v57 = vpop.f32.mrb[44].mxu0 }
 0x4a5   : > { %v1213_v58 = vadd.f32 %v2155_v57, %v1786_v50  ;;  %v1204_v59 = vpop.f32.mrb[45].mxu0 }
 0x4a6   : > { %v1205_v60 = vadd.f32 %v1786_v50, %v1204_v59  ;;  %v2156_v61 = vpop.f32.mrb[46].mxu0  ;;  %2181 = vmatprep.mubr.bf16.mxu1 %v1239_v56 }
 0x4a7   : > { %v1216_v63 = vadd.f32 %v2156_v61, %v1786_v50  ;;  %v1207_v0 = vpop.f32.mrb[47].mxu0  ;;  %2182 = vmatmul.mubr.bf16.gmra.mrb[40].mxu1 %v1240_v55  ;;  %v1233_v4 = vmax.f32 %v1213_v58, 0.0 }
 0x4a8   : > { %v1208_v2 = vadd.f32 %v1786_v50, %v1207_v0  ;;  %v1231_v6 = vmax.f32 %v1205_v60, 0.0 }
 0x4a9   : > { %v1234_v48 = vmax.f32 %v1216_v63, 0.0 }
 0x4aa   : > { %v1232_v7 = vmax.f32 %v1208_v2, 0.0 }
 0x4ab   : > { %v1242_v8 = vpack.c.bf16 %v1234_v48, %v1233_v4 }
 0x4ac   : > { %v1241_v9 = vpack.c.bf16 %v1232_v7, %v1231_v6 }
 0x4ae   : > { %2185 = vmatprep.mubr.bf16.mxu1 %v1241_v9 }
 0x4af   : > { %2186 = vmatmul.mubr.bf16.gmra.mrb[44].mxu1 %v1242_v8 }
 0x569   : > { %v2175_v11 = vpop.f32.mrb[32].mxu1 }
 0x56a   : > { %v1356_v12 = vadd.f32 %v2175_v11, %v2708_v10  ;;  %v1347_v13 = vpop.f32.mrb[33].mxu1 }
 0x56b   : > { %v1348_v15 = vadd.f32 %v2708_v10, %v1347_v13  ;;  %v2176_v50 = vpop.f32.mrb[34].mxu1 }
 0x56c   : > { %v1412_v19 = vsub.f32 0.0, %v1356_v12  ;;  %v1359_v20 = vadd.f32 %v2176_v50, %v2708_v10  ;;  %v1350_v21 = vpop.f32.mrb[35].mxu1 }
 0x56d   : > { %v1410_v22 = vsub.f32 0.0, %v1348_v15  ;;  %v1351_v23 = vadd.f32 %v2708_v10, %v1350_v21 }
 0x56e   : > { %v1430_v24 = vmul.f32 1.442695, %v1412_v19  ;;  %v1413_v25 = vsub.f32 0.0, %v1359_v20 }
 0x56f   : > { %v1426_v26 = vmul.f32 1.442695, %v1410_v22  ;;  %v1411_v27 = vsub.f32 0.0, %v1351_v23 }
 0x570   : > { %2350 = vpow2.f32 %v1430_v24  ;;  %v1432_v28 = vmul.f32 1.442695, %v1413_v25 }
 0x571   : > { %2352 = vpow2.f32 %v1426_v26  ;;  %v1428_v33 = vmul.f32 1.442695, %v1411_v27  ;;  %v2179_v34 = vpop.f32.mrb[36].mxu1 }
 0x572   : > { %2354 = vpow2.f32 %v1432_v28  ;;  %v1372_v39 = vadd.f32 %v2179_v34, %v2708_v10  ;;  %v1363_v40 = vpop.f32.mrb[37].mxu1 }
 0x573   : > { %2356 = vpow2.f32 %v1428_v33  ;;  %v1364_v41 = vadd.f32 %v2708_v10, %v1363_v40  ;;  %v2180_v42 = vpop.f32.mrb[38].mxu1 }
 0x574   : > { %v1416_v43 = vsub.f32 0.0, %v1372_v39  ;;  %v1375_v44 = vadd.f32 %v2180_v42, %v2708_v10  ;;  %v1366_v45 = vpop.f32.mrb[39].mxu1 }
 0x575   : > { %v1414_v46 = vsub.f32 0.0, %v1364_v41  ;;  %v1367_v47 = vadd.f32 %v2708_v10, %v1366_v45 }
 0x576   : > { %v1438_v49 = vmul.f32 1.442695, %v1416_v43  ;;  %v1417_v51 = vsub.f32 0.0, %v1375_v44 }
 0x577   : > { %v1434_v52 = vmul.f32 1.442695, %v1414_v46  ;;  %v1415_v53 = vsub.f32 0.0, %v1367_v47 }
 0x578   : > { %2358 = vpow2.f32 %v1438_v49  ;;  %v1440_v54 = vmul.f32 1.442695, %v1417_v51 }
 0x579   : > { %2360 = vpow2.f32 %v1434_v52  ;;  %v1436_v55 = vmul.f32 1.442695, %v1415_v53 }
 0x57a   : > { %v2351_v56 = vpop.eup %2350  ;;  %2362 = vpow2.f32 %v1440_v54  ;;  %v2183_v57 = vpop.f32.mrb[40].mxu1 }
 0x57b   : > { %v2353_v58 = vpop.eup %2352  ;;  %v1460_v59 = vadd.f32 1.0, %v2351_v56  ;;  %2364 = vpow2.f32 %v1436_v55  ;;  %v1388_v60 = vadd.f32 %v2183_v57, %v2708_v10  ;;  %v1379_v61 = vpop.f32.mrb[41].mxu1 }
 0x57c   : > { %v2355_v63 = vpop.eup %2354  ;;  %v1458_v0 = vadd.f32 1.0, %v2353_v58  ;;  %v1380_v2 = vadd.f32 %v2708_v10, %v1379_v61  ;;  %v2184_v4 = vpop.f32.mrb[42].mxu1 }
 0x57d   : > { %v2357_v48 = vpop.eup %2356  ;;  %2366 = vrcp.f32 %v1460_v59  ;;  %v1461_v6 = vadd.f32 1.0, %v2355_v63  ;;  %v1420_v7 = vsub.f32 0.0, %v1388_v60  ;;  %v1391_v8 = vadd.f32 %v2184_v4, %v2708_v10  ;;  %v1382_v9 = vpop.f32.mrb[43].mxu1 }
 0x57e   : > { %2368 = vrcp.f32 %v1458_v0  ;;  %v1459_v11 = vadd.f32 1.0, %v2357_v48  ;;  %v1418_v12 = vsub.f32 0.0, %v1380_v2  ;;  %v1383_v13 = vadd.f32 %v2708_v10, %v1382_v9 }
 0x57f   : > { %2370 = vrcp.f32 %v1461_v6  ;;  %v1446_v15 = vmul.f32 1.442695, %v1420_v7  ;;  %v1421_v50 = vsub.f32 0.0, %v1391_v8 }
 0x580   : > { %2372 = vrcp.f32 %v1459_v11  ;;  %v1442_v19 = vmul.f32 1.442695, %v1418_v12  ;;  %v1419_v20 = vsub.f32 0.0, %v1383_v13 }
 0x581   : > { %2374 = vpow2.f32 %v1446_v15  ;;  %v1448_v21 = vmul.f32 1.442695, %v1421_v50 }
 0x582   : > { %v2359_v22 = vpop.eup %2358  ;;  %2376 = vpow2.f32 %v1442_v19  ;;  %v1444_v23 = vmul.f32 1.442695, %v1419_v20  ;;  %v2187_v24 = vpop.f32.mrb[44].mxu1 }
 0x583   : > { %v2361_v25 = vpop.eup %2360  ;;  %v1464_v26 = vadd.f32 1.0, %v2359_v22  ;;  %2378 = vpow2.f32 %v1448_v21  ;;  %v1404_v27 = vadd.f32 %v2187_v24, %v2708_v10  ;;  %v1395_v28 = vpop.f32.mrb[45].mxu1 }
 0x584   : > { %v2363_v33 = vpop.eup %2362  ;;  %v1462_v34 = vadd.f32 1.0, %v2361_v25  ;;  %2380 = vpow2.f32 %v1444_v23  ;;  %v1396_v39 = vadd.f32 %v2708_v10, %v1395_v28  ;;  %v2188_v40 = vpop.f32.mrb[46].mxu1 }
 0x585   : > { %v2365_v41 = vpop.eup %2364  ;;  %2382 = vrcp.f32 %v1464_v26  ;;  %v1465_v42 = vadd.f32 1.0, %v2363_v33  ;;  %v1424_v43 = vsub.f32 0.0, %v1404_v27  ;;  %v1407_v44 = vadd.f32 %v2188_v40, %v2708_v10  ;;  %v1398_v45 = vpop.f32.mrb[47].mxu1 }
 0x586   : > { %2384 = vrcp.f32 %v1462_v34  ;;  %v1463_v46 = vadd.f32 1.0, %v2365_v41  ;;  %v1422_v47 = vsub.f32 0.0, %v1396_v39  ;;  %v1399_v49 = vadd.f32 %v2708_v10, %v1398_v45 }
 0x587   : > { %v2367_v51 = vpop.eup %2366  ;;  %2386 = vrcp.f32 %v1465_v42  ;;  %v1454_v52 = vmul.f32 1.442695, %v1424_v43  ;;  %v1425_v53 = vsub.f32 0.0, %v1407_v44 }
 0x588   : > { %v2369_v54 = vpop.eup %2368  ;;  %2388 = vrcp.f32 %v1463_v46  ;;  %v1450_v55 = vmul.f32 1.442695, %v1422_v47  ;;  %v1423_v56 = vsub.f32 0.0, %v1399_v49  ;;  %v1522_v47 = vlaneseq }
 0x589   : > { %v2371_v57 = vpop.eup %2370  ;;  %2390 = vpow2.f32 %v1454_v52  ;;  %v1456_v58 = vmul.f32 1.442695, %v1425_v53 }
 0x58a   : > { %v2373_v59 = vpop.eup %2372  ;;  %2392 = vpow2.f32 %v1450_v55  ;;  %v1452_v60 = vmul.f32 1.442695, %v1423_v56  ;;  %v2198_v61 = vpack.i.bf16 %v2371_v57, %v2367_v51  ;;  %v1523_v49 = vand.u32 127, %v1522_v47 }
 0x58b   : > { %v2375_v63 = vpop.eup %2374  ;;  %2394 = vpow2.f32 %v1456_v58  ;;  %v2203_v0 = vpack.i.bf16 %v2373_v59, %v2369_v54 }
 0x58c   : > { %v2377_v2 = vpop.eup %2376  ;;  %v1468_v10 = vadd.f32 1.0, %v2375_v63  ;;  %2396 = vpow2.f32 %v1452_v60  ;;  %2199 = vrot.lane.b32.xlu0 %v2198_v61, %s2422_s8  ;;  %vm1524_vm0 = vcmp.lt.s32.totalorder %v1523_v49, 32 }
 0x58d   : > { %v2379_v4 = vpop.eup %2378  ;;  %v1466_v48 = vadd.f32 1.0, %v2377_v2 }
 0x58e   : > { %v2381_v6 = vpop.eup %2380  ;;  %2398 = vrcp.f32 %v1468_v10  ;;  %v1469_v7 = vadd.f32 1.0, %v2379_v4 }
 0x58f   : > { %v2383_v8 = vpop.eup %2382  ;;  %2400 = vrcp.f32 %v1466_v48  ;;  %v1467_v9 = vadd.f32 1.0, %v2381_v6 }
 0x590   : > { %v2385_v11 = vpop.eup %2384  ;;  %2402 = vrcp.f32 %v1469_v7  ;;  %2204 = vrot.lane.b32.xlu0 %v2203_v0, %s2422_s8 }
 0x591   : > { %v2387_v12 = vpop.eup %2386  ;;  %2404 = vrcp.f32 %v1467_v9 }
 0x592   : > { %v2389_v13 = vpop.eup %2388  ;;  %v2208_v15 = vpack.i.bf16 %v2387_v12, %v2383_v8 }
 0x593   : > { %v2391_v50 = vpop.eup %2390  ;;  %v2213_v19 = vpack.i.bf16 %v2389_v13, %v2385_v11 }
 0x594   : > { %v2393_v20 = vpop.eup %2392  ;;  %v1472_v21 = vadd.f32 1.0, %v2391_v50  ;;  %2209 = vrot.lane.b32.xlu1 %v2208_v15, %s2422_s8 }
 0x595   : > { %v2395_v22 = vpop.eup %2394  ;;  %v1470_v23 = vadd.f32 1.0, %v2393_v20 }
 0x596   : > { %v2397_v24 = vpop.eup %2396  ;;  %2406 = vrcp.f32 %v1472_v21  ;;  %v1473_v25 = vadd.f32 1.0, %v2395_v22 }
 0x597   : > { %2408 = vrcp.f32 %v1470_v23  ;;  %v1471_v26 = vadd.f32 1.0, %v2397_v24 }
 0x598   : > { %v2399_v27 = vpop.eup %2398  ;;  %2410 = vrcp.f32 %v1473_v25  ;;  %2214 = vrot.lane.b32.xlu1 %v2213_v19, %s2422_s8 }
 0x599   : > { %v2401_v28 = vpop.eup %2400  ;;  %2412 = vrcp.f32 %v1471_v26 }
 0x59a   : > { %v2403_v33 = vpop.eup %2402 }
 0x59b   : > { %v2405_v34 = vpop.eup %2404  ;;  %v2218_v39 = vpack.i.bf16 %v2403_v33, %v2399_v27 }
 0x59c   : > { %v2223_v40 = vpack.i.bf16 %v2405_v34, %v2401_v28 }
 0x59d   : > { %2219 = vrot.lane.b32.xlu1 %v2218_v39, %s2422_s8 }
 0x59e   : > { %2224 = vrot.lane.b32.xlu0 %v2223_v40, %s2422_s8 }
 0x5a0   : > { %v2407_v41 = vpop.eup %2406 }
 0x5a1   : > { %v2409_v42 = vpop.eup %2408 }
 0x5a2   : > { %v2411_v43 = vpop.eup %2410 }
 0x5a3   : > { %v2413_v44 = vpop.eup %2412  ;;  %v2233_v45 = vpack.i.bf16 %v2411_v43, %v2407_v41 }
 0x5a4   : > { %v2228_v46 = vpack.i.bf16 %v2413_v44, %v2409_v42 }
 0x5a5   : > { %2234 = vrot.lane.b32.xlu1 %v2233_v45, %s2422_s8 }
 0x5a6   : > { %2229 = vrot.lane.b32.xlu0 %v2228_v46, %s2422_s8 }
 0x5fe   : > { %v2200_v51 = vpop.permute.xlu0 %2199 }
 0x5ff   : > { %v2202_v52 = vunpack.i.h.bf16 %v2200_v51  ;;  %v2201_v53 = vunpack.i.l.bf16 %v2200_v51 }
 0x601   : > { %v1544_v54 = vsel %vm1524_vm0, %v2625_v3, %v2202_v52  ;;  %v1543_v55 = vsel %vm1524_vm0, %v2621_v62, %v2201_v53 }
 0x602   : > { %v1862_v56 = vpack.c.bf16 %v1544_v54, %v1543_v55  ;;  %v2205_v57 = vpop.permute.xlu0 %2204 }
 0x603   : > { %v2207_v58 = vunpack.i.h.bf16 %v2205_v57  ;;  %v2206_v59 = vunpack.i.l.bf16 %v2205_v57 }
 0x604   : > { %1894 = vst [vmem:[%s2738_s12 + $0x8] sm:$0xff] %v1862_v56  }
 0x605   : > { %v1542_v60 = vsel %vm1524_vm0, %v2627_v5, %v2207_v58  ;;  %v1541_v61 = vsel %vm1524_vm0, %v2623_v1, %v2206_v59 }
 0x606   : > { %v1857_v63 = vpack.c.bf16 %v1542_v60, %v1541_v61  ;;  %v2210_v0 = vpop.permute.xlu1 %2209 }
 0x607   : > { %v2212_v2 = vunpack.i.h.bf16 %v2210_v0  ;;  %v2211_v3 = vunpack.i.l.bf16 %v2210_v0 }
 0x608   : > { %1858 = vst [vmem:[%s2738_s12] sm:$0xff] %v1857_v63  }
 0x609   : > { %v1548_v62 = vsel %vm1524_vm0, %v2637_v17, %v2212_v2  ;;  %v1547_v10 = vsel %vm1524_vm0, %v2633_v14, %v2211_v3 }
 0x60a   : > { %v1872_v4 = vpack.c.bf16 %v1548_v62, %v1547_v10  ;;  %v2215_v48 = vpop.permute.xlu1 %2214 }
 0x60b   : > { %v2217_v6 = vunpack.i.h.bf16 %v2215_v48  ;;  %v2216_v7 = vunpack.i.l.bf16 %v2215_v48 }
 0x60c   : > { %1896 = vst [vmem:[%s2738_s12 + $0x18] sm:$0xff] %v1872_v4  }
 0x60d   : > { %v1546_v1 = vsel %vm1524_vm0, %v2639_v18, %v2217_v6  ;;  %v1545_v5 = vsel %vm1524_vm0, %v2635_v16, %v2216_v7 }
 0x60e   : > { %v1867_v8 = vpack.c.bf16 %v1546_v1, %v1545_v5 }
 0x60f   : > { %v2220_v9 = vpop.permute.xlu1 %2219 }
 0x610   : > { %1895 = vst [vmem:[%s2738_s12 + $0x10] sm:$0xff] %v1867_v8   ;;  %v2222_v17 = vunpack.i.h.bf16 %v2220_v9  ;;  %v2221_v11 = vunpack.i.l.bf16 %v2220_v9  ;;  %v2225_v12 = vpop.permute.xlu0 %2224 }
 0x611   : > { %v2227_v14 = vunpack.i.h.bf16 %v2225_v12  ;;  %v2226_v13 = vunpack.i.l.bf16 %v2225_v12 }
 0x612   : > { %v1552_v15 = vsel %vm1524_vm0, %v2647_v30, %v2222_v17  ;;  %v1551_v50 = vsel %vm1524_vm0, %v2651_v32, %v2221_v11 }
 0x613   : > { %v1882_v18 = vpack.c.bf16 %v1552_v15, %v1551_v50  ;;  %v1550_v19 = vsel %vm1524_vm0, %v2649_v31, %v2227_v14  ;;  %v1549_v16 = vsel %vm1524_vm0, %v2645_v29, %v2226_v13 }
 0x614   : > { %v1877_v20 = vpack.c.bf16 %v1550_v19, %v1549_v16 }
 0x615   : > { %1898 = vst [vmem:[%s2738_s12 + $0x28] sm:$0xff] %v1882_v18  }
 0x616   : > { %1897 = vst [vmem:[%s2738_s12 + $0x20] sm:$0xff] %v1877_v20  }
 0x617   : > { %v2235_v21 = vpop.permute.xlu1 %2234 }
 0x618   : > { %v2237_v22 = vunpack.i.h.bf16 %v2235_v21  ;;  %v2236_v23 = vunpack.i.l.bf16 %v2235_v21  ;;  %v2230_v24 = vpop.permute.xlu0 %2229 }
 0x619   : > { %v2232_v30 = vunpack.i.h.bf16 %v2230_v24  ;;  %v2231_v25 = vunpack.i.l.bf16 %v2230_v24 }
 0x61a   : > { %v1556_v32 = vsel %vm1524_vm0, %v2659_v36, %v2237_v22  ;;  %v1555_v31 = vsel %vm1524_vm0, %v2663_v38, %v2236_v23 }
 0x61b   : > { %v1892_v26 = vpack.c.bf16 %v1556_v32, %v1555_v31  ;;  %v1554_v29 = vsel %vm1524_vm0, %v2661_v37, %v2232_v30  ;;  %v1553_v27 = vsel %vm1524_vm0, %v2657_v35, %v2231_v25 }
 0x61c   : > { %v1887_v28 = vpack.c.bf16 %v1554_v29, %v1553_v27 }
 0x61d   : > { %1900 = vst [vmem:[%s2738_s12 + $0x38] sm:$0xff] %v1892_v26  }
 0x61e   : > { %1899 = vst [vmem:[%s2738_s12 + $0x30] sm:$0xff] %v1887_v28  }
 0x61f PF: > { %s14_s15 = sadd.s32 1, %s2420_s15  }
 0x620   : > { %p11_p4 = scmp.ge.s32.totalorder %s14_s15, 6  }
 0x622   :  { %13 = sbr.rel (!%p11_p4) target bundleno = 1 (0x1), region = 70 }

</bundles_post_ra>
